<compile_context>
chip_gen: v6e
topology: v6e:2x2x1
jax: 0.10.0
libtpu: 0.0.40
codegen_flags: <defaults>
</compile_context>

<pallas_src>
import functools
import math

import jax
import jax.numpy as jnp
from jax.experimental import pallas as pl
from jax.experimental.pallas import tpu as pltpu


# ----------------------------- Pallas kernel --------------------------------

def transformer_kernel(x_ref,
                       ln1g_ref, ln1b_ref, wq_ref, wk_ref, wv_ref, wp_ref,
                       bp_ref, ln2g_ref, ln2b_ref, w1_ref, b1_ref, w2_ref,
                       b2_ref, out_ref, ctx_ref,
                       *, num_heads: int, batch_per_block: int, seq: int,
                       rows_per_block: int, mm_dtype, eps: float = 1e-5):
    g = pl.program_id(0)          # batch-block axis ("parallel")
    layer = pl.program_id(1)      # layer axis ("arbitrary", innermost)

    # First layer of each batch block: pull this block's rows out of the
    # fully VMEM-resident input into the resident output block; later layers
    # read/modify/write that block in place (accumulator across the layer
    # axis), so activations hit HBM exactly once per batch block.
    @pl.when(layer == 0)
    def _():
        r0 = pl.multiple_of(g * rows_per_block, rows_per_block)
        out_ref[...] = x_ref[pl.ds(r0, rows_per_block), :]

    x = out_ref[...]                                   # (rows, C) float32
    C = x.shape[-1]
    D = C // num_heads
    B = batch_per_block
    N = seq

    def matmul(a, b):
        # Cast only at the dot boundary (bf16-native MXU on v6e/v7x);
        # accumulate in f32. Weights are already stored in mm_dtype.
        return jnp.dot(a.astype(mm_dtype), b.astype(mm_dtype),
                       preferred_element_type=jnp.float32)

    def layernorm(z, gamma, beta):
        mu = jnp.mean(z, axis=-1, keepdims=True)
        var = jnp.mean((z - mu) ** 2, axis=-1, keepdims=True)
        return (z - mu) * jax.lax.rsqrt(var + eps) * gamma + beta

    # --- LayerNorm 1 + multi-head self-attention (bias=False on q/kv) -------
    xn = layernorm(x, ln1g_ref[...], ln1b_ref[...])    # (rows, C) f32

    # Fused, lane-dense projections: full (rows,C)x(C,C) dots (MXU-efficient,
    # no per-head D-wide outputs). 1/sqrt(D) is folded into wq at prep time.
    q = matmul(xn, wq_ref[...])                        # (rows, C)
    k = matmul(xn, wk_ref[...])                        # (rows, C)
    v = matmul(xn, wv_ref[...])                        # (rows, C)

    # Batch-major 3D views for the batched score/context einsums. The reshape
    # only splits the sublane (row) dim; layout-trivial when N % 8 == 0.
    q3 = q.reshape(B, N, C)
    k3 = k.reshape(B, N, C)
    v3 = v.reshape(B, N, C)

    # Static loop over heads only (trip count <= num_heads, small). The batch
    # loop is folded into batched einsums, so there is no H*B unroll blowup,
    # and static head offsets keep the ctx scratch stores statically sliced.
    for h in range(num_heads):
        lo = h * D
        qh = q3[:, :, lo:lo + D]                       # (B, N, D) value slices
        kh = k3[:, :, lo:lo + D]
        vh = v3[:, :, lo:lo + D]
        # Cast to bf16 only AFTER slicing (avoids splitting packed bf16 vregs).
        s = jnp.einsum('bnd,bmd->bnm', qh.astype(mm_dtype), kh.astype(mm_dtype),
                       preferred_element_type=jnp.float32)     # (B, N, N)
        s = s - jnp.max(s, axis=-1, keepdims=True)
        p = jnp.exp(s)
        p = p * pl.reciprocal(jnp.sum(p, axis=-1, keepdims=True),
                              approx=True)             # EUP reciprocal
        ctx = jnp.einsum('bnm,bmd->bnd', p.astype(mm_dtype), vh.astype(mm_dtype),
                         preferred_element_type=jnp.float32)   # (B, N, D)
        # Write this head's context into its lane slice of the VMEM scratch.
        ctx_ref[:, lo:lo + D] = ctx.reshape(rows_per_block, D)

    # Single full-K output projection over the assembled (rows, C) context.
    attn = matmul(ctx_ref[...], wp_ref[...]) + bp_ref[...]
    x = x + attn                                        # residual 1

    # --- LayerNorm 2 + MLP (ReLU, mlp_ratio hidden) --------------------------
    xn2 = layernorm(x, ln2g_ref[...], ln2b_ref[...])
    h1 = jnp.maximum(matmul(xn2, w1_ref[...]) + b1_ref[...], 0.0)
    out_ref[...] = x + matmul(h1, w2_ref[...]) + b2_ref[...]   # residual 2

    # TODO(synk): cross-attention (enc_dec=True / y != None) and the boolean
    # mask path of MultiHeadAttention are not exercised here; only the default
    # self-attention forward is kernelized.


# ------------------------------ wrappers -------------------------------------

_PARAM_ORDER = ("ln1_g", "ln1_b", "wq", "wk", "wv", "wp", "bp",
                "ln2_g", "ln2_b", "w1", "b1", "w2", "b2")


def prepare_params(layer_params, num_heads, mm_dtype=jnp.bfloat16):
    """One-time (free) parameter plumbing outside the kernel:
      * split wkv into full-width wk / wv (self-attention path, dim_ref==C),
      * fold the 1/sqrt(D) attention scale into wq,
      * store all matmul weights in mm_dtype (bf16 by default) -> halves
        weight DMA bytes and VMEM footprint; LN params and biases stay f32,
      * stack everything along a leading layer axis for the layer grid.
    For real model sizes, prefer C and the MLP hidden dim as multiples of 128
    (lane-dense stores / unpadded MXU tiles)."""
    prepped = []
    for p in layer_params:
        C = p["wq"].shape[0]
        assert p["wkv"].shape[0] == C, "self-attention kernel assumes dim_ref == dim_self"
        D = C // num_heads
        scale = float(D) ** -0.5
        prepped.append({
            "ln1_g": p["ln1_g"].astype(jnp.float32),
            "ln1_b": p["ln1_b"].astype(jnp.float32),
            "wq": (p["wq"] * scale).astype(mm_dtype),          # (C, C), scale folded
            "wk": p["wkv"][:, :C].astype(mm_dtype),             # (C, C)
            "wv": p["wkv"][:, C:].astype(mm_dtype),             # (C, C)
            "wp": p["wp"].astype(mm_dtype),                     # (C, C)
            "bp": p["bp"].astype(jnp.float32),
            "ln2_g": p["ln2_g"].astype(jnp.float32),
            "ln2_b": p["ln2_b"].astype(jnp.float32),
            "w1": p["w1"].astype(mm_dtype), "b1": p["b1"].astype(jnp.float32),
            "w2": p["w2"].astype(mm_dtype), "b2": p["b2"].astype(jnp.float32),
        })
    return {k: jnp.stack([q[k] for q in prepped], axis=0) for k in _PARAM_ORDER}


def _layer_weight_spec(arr):
    # Per-layer weight tile: squeeze the layer axis, full block over the rest.
    rest = arr.shape[1:]
    zeros = (0,) * len(rest)
    return pl.BlockSpec((None,) + rest, lambda g, l, _z=zeros: (l,) + _z)


def _pick_batch_blocks(B, N):
    # Two batch blocks so v7x's two TensorCores both get work; fall back to 1
    # if the split would violate the 8-sublane block constraint. No effect on
    # v5e/v6e (single TC) beyond a second (cheap) weight pass.
    if B % 2 == 0 and ((B // 2) * N) % 8 == 0:
        return 2
    return 1


def _derive_vmem_limit(x_bytes, out_block_bytes, ctx_bytes, per_layer_w_bytes,
                       cap_bytes=56 * 1024 * 1024):
    # Resident x + resident activation block + ctx scratch + double-buffered
    # per-layer weights, with headroom for in-kernel temporaries. Capped at
    # 56 MiB so it fits v7x's 64 MiB physical VMEM; on v5e/v6e (128 MiB) the
    # cap can be raised toward ~100 MiB for larger whole-layer weight blocks.
    need = x_bytes + out_block_bytes + ctx_bytes + 2 * per_layer_w_bytes
    need = int(need * 1.5) + (4 << 20)
    return max(16 << 20, min(need, cap_bytes))


def transformer_forward(x, stacked_params, num_heads, mm_dtype=jnp.bfloat16):
    B, N, C = x.shape
    num_layers = stacked_params["ln1_g"].shape[0]
    weights = [stacked_params[k] for k in _PARAM_ORDER]
    x2d = x.reshape(B * N, C).astype(jnp.float32)      # flat, lane-dense row slab

    batch_blocks = _pick_batch_blocks(B, N)
    batch_per_block = B // batch_blocks
    rows_per_block = batch_per_block * N

    per_layer_w_bytes = sum(
        math.prod(w.shape[1:]) * w.dtype.itemsize for w in weights)
    vmem_limit = _derive_vmem_limit(
        x_bytes=x2d.size * 4,
        out_block_bytes=rows_per_block * C * 4,
        ctx_bytes=rows_per_block * C * 4,
        per_layer_w_bytes=per_layer_w_bytes)

    kernel = functools.partial(
        transformer_kernel, num_heads=num_heads,
        batch_per_block=batch_per_block, seq=N,
        rows_per_block=rows_per_block, mm_dtype=mm_dtype)

    out = pl.pallas_call(
        kernel,
        out_shape=jax.ShapeDtypeStruct((B * N, C), jnp.float32),
        grid=(batch_blocks, num_layers),
        in_specs=[
            # x: whole array resident in VMEM once (single buffer); it is only
            # read at layer 0 of each batch block, so no pipelined copies.
            pl.BlockSpec(memory_space=pltpu.MemorySpace.VMEM),
        ] + [_layer_weight_spec(w) for w in weights],
        out_specs=pl.BlockSpec((rows_per_block, C), lambda g, l: (g, 0)),
        scratch_shapes=[pltpu.VMEM((rows_per_block, C), jnp.float32)],  # ctx
        compiler_params=pltpu.CompilerParams(
            # Batch blocks are independent -> "parallel" (v7x 2 TCs);
            # layer axis is a dependent chain -> "arbitrary" and innermost so
            # the activation block stays VMEM-resident across layers.
            dimension_semantics=("parallel", "arbitrary"),
            vmem_limit_bytes=vmem_limit,
        ),
    )(x2d, *weights)
    return out.reshape(B, N, C).astype(x.dtype)


# -------------------- deterministic parameter construction -------------------

def init_layer_params(key, dim_self, dim_ref, mlp_ratio):
    h = int(dim_self * mlp_ratio)
    ks = jax.random.split(key, 10)
    s = 0.05
    f32 = jnp.float32
    return {
        "ln1_g": 1.0 + s * jax.random.normal(ks[0], (1, dim_self), f32),
        "ln1_b": s * jax.random.normal(ks[1], (1, dim_self), f32),
        "wq":    s * jax.random.normal(ks[2], (dim_self, dim_self), f32),
        "wkv":   s * jax.random.normal(ks[3], (dim_ref, 2 * dim_self), f32),
        "wp":    s * jax.random.normal(ks[4], (dim_self, dim_self), f32),
        "bp":    s * jax.random.normal(ks[5], (1, dim_self), f32),
        "ln2_g": 1.0 + s * jax.random.normal(ks[6], (1, dim_self), f32),
        "ln2_b": s * jax.random.normal(ks[7], (1, dim_self), f32),
        "w1":    s * jax.random.normal(ks[8], (dim_self, h), f32),
        "b1":    s * jax.random.normal(ks[9], (1, h), f32),
        "w2":    s * jax.random.normal(jax.random.fold_in(key, 99), (h, dim_self), f32),
        "b2":    s * jax.random.normal(jax.random.fold_in(key, 100), (1, dim_self), f32),
    }


# -------------------------- pure-JAX reference --------------------------------

def ref_layer(x, p, num_heads, eps=1e-5):
    B, N, C = x.shape
    D = C // num_heads

    def ln(z, g, b):
        mu = z.mean(-1, keepdims=True)
        var = ((z - mu) ** 2).mean(-1, keepdims=True)
        return (z - mu) / jnp.sqrt(var + eps) * g.reshape(-1) + b.reshape(-1)

    xn = ln(x, p["ln1_g"], p["ln1_b"])
    q = (xn @ p["wq"]).reshape(B, N, num_heads, D)
    kv = (xn @ p["wkv"]).reshape(B, N, 2, num_heads, D)
    k, v = kv[:, :, 0], kv[:, :, 1]
    att = jnp.einsum("bnhd,bmhd->bnmh", q, k) * (D ** -0.5)
    att = jax.nn.softmax(att, axis=2)
    out = jnp.einsum("bnmh,bmhd->bnhd", att, v).reshape(B, N, C)
    out = out @ p["wp"] + p["bp"].reshape(-1)
    x = x + out
    xn2 = ln(x, p["ln2_g"], p["ln2_b"])
    h1 = jnp.maximum(xn2 @ p["w1"] + p["b1"].reshape(-1), 0.0)
    return x + h1 @ p["w2"] + p["b2"].reshape(-1)


def ref_forward(x, layer_params, num_heads):
    for p in layer_params:
        x = ref_layer(x, p, num_heads)
    return x


# ---------------------------------- main --------------------------------------

if __name__ == "__main__":
    dim_self = 32      # hidden size (pad to a multiple of 128 for real models)
    num_heads = 4
    num_layers = 2
    mlp_ratio = 2.0    # Transformer default
    B, N = 2, 8        # batch, sequence length

    root = jax.random.PRNGKey(0)
    kx, kp = jax.random.split(root)
    x = jax.random.normal(kx, (B, N, dim_self), jnp.float32)

    layer_keys = jax.random.split(kp, num_layers)
    layer_params = [init_layer_params(k, dim_self, dim_self, mlp_ratio)
                    for k in layer_keys]
    stacked = prepare_params(layer_params, num_heads, mm_dtype=jnp.bfloat16)

    out = transformer_forward(x, stacked, num_heads, mm_dtype=jnp.bfloat16)
    out = jax.block_until_ready(out)

    ref = ref_forward(x, layer_params, num_heads)
    assert out.shape == (B, N, dim_self)
    # Tolerance covers bf16 weight storage + bf16 dot boundaries (f32
    # accumulation) and the EUP approximate reciprocal in the softmax; all
    # LayerNorm / softmax / residual math stays f32.
    err = jnp.max(jnp.abs(out - ref))
    assert jnp.allclose(out, ref, atol=2e-2, rtol=2e-2), f"max err {err}"

    print("KERNEL_OK")
</pallas_src>

<mosaic_0001>
module attributes {stable_mosaic.version = 11 : i64} {
  func.func @transformer_kernel(%arg0: i32, %arg1: i32, %arg2: memref<16x32xf32, #tpu.memory_space<vmem>>, %arg3: memref<1x1x32xf32, #tpu.memory_space<vmem>>, %arg4: memref<1x1x32xf32, #tpu.memory_space<vmem>>, %arg5: memref<1x32x32xbf16, #tpu.memory_space<vmem>>, %arg6: memref<1x32x32xbf16, #tpu.memory_space<vmem>>, %arg7: memref<1x32x32xbf16, #tpu.memory_space<vmem>>, %arg8: memref<1x32x32xbf16, #tpu.memory_space<vmem>>, %arg9: memref<1x1x32xf32, #tpu.memory_space<vmem>>, %arg10: memref<1x1x32xf32, #tpu.memory_space<vmem>>, %arg11: memref<1x1x32xf32, #tpu.memory_space<vmem>>, %arg12: memref<1x32x64xbf16, #tpu.memory_space<vmem>>, %arg13: memref<1x1x64xf32, #tpu.memory_space<vmem>>, %arg14: memref<1x64x32xbf16, #tpu.memory_space<vmem>>, %arg15: memref<1x1x32xf32, #tpu.memory_space<vmem>>, %arg16: memref<8x32xf32, #tpu.memory_space<vmem>>, %arg17: memref<8x32xf32, #tpu.memory_space<vmem>>) attributes {dimension_semantics = [#tpu.dimension_semantics<parallel>, #tpu.dimension_semantics<arbitrary>], iteration_bounds = array<i64: 2, 2>, scalar_prefetch = 0 : i64, scratch_operands = 1 : i64, tpu.core_type = #tpu.core_type<tc>, window_params = [{pipeline_mode = #tpu.pipeline_mode<synchronous>, transform_indices = @transform_0, window_bounds = array<i64: 16, 32>}, {transform_indices = @transform_1, window_bounds = array<i64: 1, 1, 32>}, {transform_indices = @transform_2, window_bounds = array<i64: 1, 1, 32>}, {transform_indices = @transform_3, window_bounds = array<i64: 1, 32, 32>}, {transform_indices = @transform_4, window_bounds = array<i64: 1, 32, 32>}, {transform_indices = @transform_5, window_bounds = array<i64: 1, 32, 32>}, {transform_indices = @transform_6, window_bounds = array<i64: 1, 32, 32>}, {transform_indices = @transform_7, window_bounds = array<i64: 1, 1, 32>}, {transform_indices = @transform_8, window_bounds = array<i64: 1, 1, 32>}, {transform_indices = @transform_9, window_bounds = array<i64: 1, 1, 32>}, {transform_indices = @transform_10, window_bounds = array<i64: 1, 32, 64>}, {transform_indices = @transform_11, window_bounds = array<i64: 1, 1, 64>}, {transform_indices = @transform_12, window_bounds = array<i64: 1, 64, 32>}, {transform_indices = @transform_13, window_bounds = array<i64: 1, 1, 32>}, {transform_indices = @transform_14, window_bounds = array<i64: 8, 32>}]} {
    %c0_i32 = arith.constant 0 : i32
    %0 = arith.cmpi eq, %arg1, %c0_i32 : i32
    %1 = arith.extui %0 : i1 to i32
    %c0_i32_0 = arith.constant 0 : i32
    %2 = arith.cmpi ne, %1, %c0_i32_0 : i32
    scf.if %2 {
      %c8_i32 = arith.constant 8 : i32
      %185 = arith.muli %arg0, %c8_i32 : i32
      %186 = tpu.assume_multiple %185, 8 : i32
      %187 = arith.index_cast %186 : i32 to index
      %c0_82 = arith.constant 0 : index
      %188 = vector.load %arg2[%187, %c0_82] : memref<16x32xf32, #tpu.memory_space<vmem>>, vector<8x32xf32>
      %c0_83 = arith.constant 0 : index
      %c0_84 = arith.constant 0 : index
      %189 = vector.load %arg16[%c0_83, %c0_84] : memref<8x32xf32, #tpu.memory_space<vmem>>, vector<8x32xf32>
      tpu.vector_store %arg16[%c0_83, %c0_84], %188 {strides = array<i32>} : memref<8x32xf32, #tpu.memory_space<vmem>>, vector<8x32xf32>,
    } else {
    }
    %c0 = arith.constant 0 : index
    %c0_1 = arith.constant 0 : index
    %3 = vector.load %arg16[%c0, %c0_1] : memref<8x32xf32, #tpu.memory_space<vmem>>, vector<8x32xf32>
    %c0_2 = arith.constant 0 : index
    %c0_3 = arith.constant 0 : index
    %c0_4 = arith.constant 0 : index
    %4 = vector.load %arg3[%c0_2, %c0_3, %c0_4] : memref<1x1x32xf32, #tpu.memory_space<vmem>>, vector<1x1x32xf32>
    %5 = vector.shape_cast %4 : vector<1x1x32xf32> to vector<1x32xf32>
    %c0_5 = arith.constant 0 : index
    %c0_6 = arith.constant 0 : index
    %c0_7 = arith.constant 0 : index
    %6 = vector.load %arg4[%c0_5, %c0_6, %c0_7] : memref<1x1x32xf32, #tpu.memory_space<vmem>>, vector<1x1x32xf32>
    %7 = vector.shape_cast %6 : vector<1x1x32xf32> to vector<1x32xf32>
    %cst = arith.constant dense<0.000000e+00> : vector<8xf32>
    %8 = vector.multi_reduction <add>, %3, %cst [1] : vector<8x32xf32> to vector<8xf32>
    %9 = vector.shape_cast %8 : vector<8xf32> to vector<8x1xf32>
    %cst_8 = arith.constant 3.200000e+01 : f32
    %10 = vector.broadcast %cst_8 : f32 to vector<8x1xf32>
    %11 = arith.divf %9, %10 : vector<8x1xf32>
    %12 = vector.broadcast %11 : vector<8x1xf32> to vector<8x32xf32>
    %13 = arith.subf %3, %12 : vector<8x32xf32>
    %14 = arith.mulf %13, %13 : vector<8x32xf32>
    %cst_9 = arith.constant dense<0.000000e+00> : vector<8xf32>
    %15 = vector.multi_reduction <add>, %14, %cst_9 [1] : vector<8x32xf32> to vector<8xf32>
    %16 = vector.shape_cast %15 : vector<8xf32> to vector<8x1xf32>
    %cst_10 = arith.constant 3.200000e+01 : f32
    %17 = vector.broadcast %cst_10 : f32 to vector<8x1xf32>
    %18 = arith.divf %16, %17 : vector<8x1xf32>
    %19 = vector.broadcast %11 : vector<8x1xf32> to vector<8x32xf32>
    %20 = arith.subf %3, %19 : vector<8x32xf32>
    %cst_11 = arith.constant 9.99999974E-6 : f32
    %21 = vector.broadcast %cst_11 : f32 to vector<8x1xf32>
    %22 = arith.addf %18, %21 : vector<8x1xf32>
    %23 = math.rsqrt %22 : vector<8x1xf32>
    %24 = vector.broadcast %23 : vector<8x1xf32> to vector<8x32xf32>
    %25 = arith.mulf %20, %24 : vector<8x32xf32>
    %26 = vector.broadcast %5 : vector<1x32xf32> to vector<8x32xf32>
    %27 = arith.mulf %25, %26 : vector<8x32xf32>
    %28 = vector.broadcast %7 : vector<1x32xf32> to vector<8x32xf32>
    %29 = arith.addf %27, %28 : vector<8x32xf32>
    %c0_12 = arith.constant 0 : index
    %c0_13 = arith.constant 0 : index
    %c0_14 = arith.constant 0 : index
    %30 = vector.load %arg5[%c0_12, %c0_13, %c0_14] : memref<1x32x32xbf16, #tpu.memory_space<vmem>>, vector<1x32x32xbf16>
    %31 = vector.shape_cast %30 : vector<1x32x32xbf16> to vector<32x32xbf16>
    %32 = arith.truncf %29 : vector<8x32xf32> to vector<8x32xbf16>
    %cst_15 = arith.constant dense<0.000000e+00> : vector<8x32xf32>
    %33 = tpu.matmul %32, %31, %cst_15 {dimension_numbers = #tpu.dot_dimension_numbers<[1], [0], [0], [1], [0, 0, 1, 1], [], []>} : vector<8x32xbf16>, vector<32x32xbf16>, vector<8x32xf32> -> vector<8x32xf32>
    %c0_16 = arith.constant 0 : index
    %c0_17 = arith.constant 0 : index
    %c0_18 = arith.constant 0 : index
    %34 = vector.load %arg6[%c0_16, %c0_17, %c0_18] : memref<1x32x32xbf16, #tpu.memory_space<vmem>>, vector<1x32x32xbf16>
    %35 = vector.shape_cast %34 : vector<1x32x32xbf16> to vector<32x32xbf16>
    %36 = arith.truncf %29 : vector<8x32xf32> to vector<8x32xbf16>
    %cst_19 = arith.constant dense<0.000000e+00> : vector<8x32xf32>
    %37 = tpu.matmul %36, %35, %cst_19 {dimension_numbers = #tpu.dot_dimension_numbers<[1], [0], [0], [1], [0, 0, 1, 1], [], []>} : vector<8x32xbf16>, vector<32x32xbf16>, vector<8x32xf32> -> vector<8x32xf32>
    %c0_20 = arith.constant 0 : index
    %c0_21 = arith.constant 0 : index
    %c0_22 = arith.constant 0 : index
    %38 = vector.load %arg7[%c0_20, %c0_21, %c0_22] : memref<1x32x32xbf16, #tpu.memory_space<vmem>>, vector<1x32x32xbf16>
    %39 = vector.shape_cast %38 : vector<1x32x32xbf16> to vector<32x32xbf16>
    %40 = arith.truncf %29 : vector<8x32xf32> to vector<8x32xbf16>
    %cst_23 = arith.constant dense<0.000000e+00> : vector<8x32xf32>
    %41 = tpu.matmul %40, %39, %cst_23 {dimension_numbers = #tpu.dot_dimension_numbers<[1], [0], [0], [1], [0, 0, 1, 1], [], []>} : vector<8x32xbf16>, vector<32x32xbf16>, vector<8x32xf32> -> vector<8x32xf32>
    %42 = vector.shape_cast %33 : vector<8x32xf32> to vector<1x8x32xf32>
    %43 = vector.shape_cast %37 : vector<8x32xf32> to vector<1x8x32xf32>
    %44 = vector.shape_cast %41 : vector<8x32xf32> to vector<1x8x32xf32>
    %45 = vector.extract_strided_slice %42 {offsets = [0, 0, 0], sizes = [1, 8, 8], strides = [1, 1, 1]} : vector<1x8x32xf32> to vector<1x8x8xf32>
    %46 = vector.extract_strided_slice %43 {offsets = [0, 0, 0], sizes = [1, 8, 8], strides = [1, 1, 1]} : vector<1x8x32xf32> to vector<1x8x8xf32>
    %47 = vector.extract_strided_slice %44 {offsets = [0, 0, 0], sizes = [1, 8, 8], strides = [1, 1, 1]} : vector<1x8x32xf32> to vector<1x8x8xf32>
    %48 = arith.truncf %45 : vector<1x8x8xf32> to vector<1x8x8xbf16>
    %49 = arith.truncf %46 : vector<1x8x8xf32> to vector<1x8x8xbf16>
    "tpu.trace_start"() <{level = 10 : i32, message = "bnd,bmd->bnm"}> : () -> ()
    %cst_24 = arith.constant dense<0.000000e+00> : vector<1x8x8xf32>
    %50 = tpu.matmul %48, %49, %cst_24 {dimension_numbers = #tpu.dot_dimension_numbers<[2], [2], [1], [1], [0, 0, 0, 1, 1, 1], [0], [0]>} : vector<1x8x8xbf16>, vector<1x8x8xbf16>, vector<1x8x8xf32> -> vector<1x8x8xf32>
    "tpu.trace_stop"() : () -> ()
    %cst_25 = arith.constant dense<0xFF800000> : vector<1x8xf32>
    %51 = vector.multi_reduction <maximumf>, %50, %cst_25 [2] : vector<1x8x8xf32> to vector<1x8xf32>
    %52 = vector.shape_cast %51 : vector<1x8xf32> to vector<1x8x1xf32>
    %53 = vector.broadcast %52 : vector<1x8x1xf32> to vector<1x8x8xf32>
    %54 = arith.subf %50, %53 : vector<1x8x8xf32>
    %55 = math.exp %54 : vector<1x8x8xf32>
    %cst_26 = arith.constant dense<0.000000e+00> : vector<1x8xf32>
    %56 = vector.multi_reduction <add>, %55, %cst_26 [2] : vector<1x8x8xf32> to vector<1x8xf32>
    %57 = vector.shape_cast %56 : vector<1x8xf32> to vector<1x8x1xf32>
    %58 = tpu.reciprocal %57 {approx = true} : vector<1x8x1xf32> -> vector<1x8x1xf32>
    %59 = vector.broadcast %58 : vector<1x8x1xf32> to vector<1x8x8xf32>
    %60 = arith.mulf %55, %59 : vector<1x8x8xf32>
    %61 = arith.truncf %60 : vector<1x8x8xf32> to vector<1x8x8xbf16>
    %62 = arith.truncf %47 : vector<1x8x8xf32> to vector<1x8x8xbf16>
    "tpu.trace_start"() <{level = 10 : i32, message = "bnm,bmd->bnd"}> : () -> ()
    %cst_27 = arith.constant dense<0.000000e+00> : vector<1x8x8xf32>
    %63 = tpu.matmul %61, %62, %cst_27 {dimension_numbers = #tpu.dot_dimension_numbers<[2], [1], [1], [2], [0, 0, 0, 1, 1, 2], [0], [0]>} : vector<1x8x8xbf16>, vector<1x8x8xbf16>, vector<1x8x8xf32> -> vector<1x8x8xf32>
    "tpu.trace_stop"() : () -> ()
    %64 = vector.shape_cast %63 : vector<1x8x8xf32> to vector<8x8xf32>
    %c0_28 = arith.constant 0 : index
    %c0_29 = arith.constant 0 : index
    %65 = vector.load %arg17[%c0_28, %c0_29] : memref<8x32xf32, #tpu.memory_space<vmem>>, vector<8x8xf32>
    tpu.vector_store %arg17[%c0_28, %c0_29], %64 {strides = array<i32>} : memref<8x32xf32, #tpu.memory_space<vmem>>, vector<8x8xf32>,
    %66 = vector.extract_strided_slice %42 {offsets = [0, 0, 8], sizes = [1, 8, 8], strides = [1, 1, 1]} : vector<1x8x32xf32> to vector<1x8x8xf32>
    %67 = vector.extract_strided_slice %43 {offsets = [0, 0, 8], sizes = [1, 8, 8], strides = [1, 1, 1]} : vector<1x8x32xf32> to vector<1x8x8xf32>
    %68 = vector.extract_strided_slice %44 {offsets = [0, 0, 8], sizes = [1, 8, 8], strides = [1, 1, 1]} : vector<1x8x32xf32> to vector<1x8x8xf32>
    %69 = arith.truncf %66 : vector<1x8x8xf32> to vector<1x8x8xbf16>
    %70 = arith.truncf %67 : vector<1x8x8xf32> to vector<1x8x8xbf16>
    "tpu.trace_start"() <{level = 10 : i32, message = "bnd,bmd->bnm"}> : () -> ()
    %cst_30 = arith.constant dense<0.000000e+00> : vector<1x8x8xf32>
    %71 = tpu.matmul %69, %70, %cst_30 {dimension_numbers = #tpu.dot_dimension_numbers<[2], [2], [1], [1], [0, 0, 0, 1, 1, 1], [0], [0]>} : vector<1x8x8xbf16>, vector<1x8x8xbf16>, vector<1x8x8xf32> -> vector<1x8x8xf32>
    "tpu.trace_stop"() : () -> ()
    %cst_31 = arith.constant dense<0xFF800000> : vector<1x8xf32>
    %72 = vector.multi_reduction <maximumf>, %71, %cst_31 [2] : vector<1x8x8xf32> to vector<1x8xf32>
    %73 = vector.shape_cast %72 : vector<1x8xf32> to vector<1x8x1xf32>
    %74 = vector.broadcast %73 : vector<1x8x1xf32> to vector<1x8x8xf32>
    %75 = arith.subf %71, %74 : vector<1x8x8xf32>
    %76 = math.exp %75 : vector<1x8x8xf32>
    %cst_32 = arith.constant dense<0.000000e+00> : vector<1x8xf32>
    %77 = vector.multi_reduction <add>, %76, %cst_32 [2] : vector<1x8x8xf32> to vector<1x8xf32>
    %78 = vector.shape_cast %77 : vector<1x8xf32> to vector<1x8x1xf32>
    %79 = tpu.reciprocal %78 {approx = true} : vector<1x8x1xf32> -> vector<1x8x1xf32>
    %80 = vector.broadcast %79 : vector<1x8x1xf32> to vector<1x8x8xf32>
    %81 = arith.mulf %76, %80 : vector<1x8x8xf32>
    %82 = arith.truncf %81 : vector<1x8x8xf32> to vector<1x8x8xbf16>
    %83 = arith.truncf %68 : vector<1x8x8xf32> to vector<1x8x8xbf16>
    "tpu.trace_start"() <{level = 10 : i32, message = "bnm,bmd->bnd"}> : () -> ()
    %cst_33 = arith.constant dense<0.000000e+00> : vector<1x8x8xf32>
    %84 = tpu.matmul %82, %83, %cst_33 {dimension_numbers = #tpu.dot_dimension_numbers<[2], [1], [1], [2], [0, 0, 0, 1, 1, 2], [0], [0]>} : vector<1x8x8xbf16>, vector<1x8x8xbf16>, vector<1x8x8xf32> -> vector<1x8x8xf32>
    "tpu.trace_stop"() : () -> ()
    %85 = vector.shape_cast %84 : vector<1x8x8xf32> to vector<8x8xf32>
    %c0_34 = arith.constant 0 : index
    %c8 = arith.constant 8 : index
    %86 = vector.load %arg17[%c0_34, %c8] : memref<8x32xf32, #tpu.memory_space<vmem>>, vector<8x8xf32>
    tpu.vector_store %arg17[%c0_34, %c8], %85 {strides = array<i32>} : memref<8x32xf32, #tpu.memory_space<vmem>>, vector<8x8xf32>,
    %87 = vector.extract_strided_slice %42 {offsets = [0, 0, 16], sizes = [1, 8, 8], strides = [1, 1, 1]} : vector<1x8x32xf32> to vector<1x8x8xf32>
    %88 = vector.extract_strided_slice %43 {offsets = [0, 0, 16], sizes = [1, 8, 8], strides = [1, 1, 1]} : vector<1x8x32xf32> to vector<1x8x8xf32>
    %89 = vector.extract_strided_slice %44 {offsets = [0, 0, 16], sizes = [1, 8, 8], strides = [1, 1, 1]} : vector<1x8x32xf32> to vector<1x8x8xf32>
    %90 = arith.truncf %87 : vector<1x8x8xf32> to vector<1x8x8xbf16>
    %91 = arith.truncf %88 : vector<1x8x8xf32> to vector<1x8x8xbf16>
    "tpu.trace_start"() <{level = 10 : i32, message = "bnd,bmd->bnm"}> : () -> ()
    %cst_35 = arith.constant dense<0.000000e+00> : vector<1x8x8xf32>
    %92 = tpu.matmul %90, %91, %cst_35 {dimension_numbers = #tpu.dot_dimension_numbers<[2], [2], [1], [1], [0, 0, 0, 1, 1, 1], [0], [0]>} : vector<1x8x8xbf16>, vector<1x8x8xbf16>, vector<1x8x8xf32> -> vector<1x8x8xf32>
    "tpu.trace_stop"() : () -> ()
    %cst_36 = arith.constant dense<0xFF800000> : vector<1x8xf32>
    %93 = vector.multi_reduction <maximumf>, %92, %cst_36 [2] : vector<1x8x8xf32> to vector<1x8xf32>
    %94 = vector.shape_cast %93 : vector<1x8xf32> to vector<1x8x1xf32>
    %95 = vector.broadcast %94 : vector<1x8x1xf32> to vector<1x8x8xf32>
    %96 = arith.subf %92, %95 : vector<1x8x8xf32>
    %97 = math.exp %96 : vector<1x8x8xf32>
    %cst_37 = arith.constant dense<0.000000e+00> : vector<1x8xf32>
    %98 = vector.multi_reduction <add>, %97, %cst_37 [2] : vector<1x8x8xf32> to vector<1x8xf32>
    %99 = vector.shape_cast %98 : vector<1x8xf32> to vector<1x8x1xf32>
    %100 = tpu.reciprocal %99 {approx = true} : vector<1x8x1xf32> -> vector<1x8x1xf32>
    %101 = vector.broadcast %100 : vector<1x8x1xf32> to vector<1x8x8xf32>
    %102 = arith.mulf %97, %101 : vector<1x8x8xf32>
    %103 = arith.truncf %102 : vector<1x8x8xf32> to vector<1x8x8xbf16>
    %104 = arith.truncf %89 : vector<1x8x8xf32> to vector<1x8x8xbf16>
    "tpu.trace_start"() <{level = 10 : i32, message = "bnm,bmd->bnd"}> : () -> ()
    %cst_38 = arith.constant dense<0.000000e+00> : vector<1x8x8xf32>
    %105 = tpu.matmul %103, %104, %cst_38 {dimension_numbers = #tpu.dot_dimension_numbers<[2], [1], [1], [2], [0, 0, 0, 1, 1, 2], [0], [0]>} : vector<1x8x8xbf16>, vector<1x8x8xbf16>, vector<1x8x8xf32> -> vector<1x8x8xf32>
    "tpu.trace_stop"() : () -> ()
    %106 = vector.shape_cast %105 : vector<1x8x8xf32> to vector<8x8xf32>
    %c0_39 = arith.constant 0 : index
    %c16 = arith.constant 16 : index
    %107 = vector.load %arg17[%c0_39, %c16] : memref<8x32xf32, #tpu.memory_space<vmem>>, vector<8x8xf32>
    tpu.vector_store %arg17[%c0_39, %c16], %106 {strides = array<i32>} : memref<8x32xf32, #tpu.memory_space<vmem>>, vector<8x8xf32>,
    %108 = vector.extract_strided_slice %42 {offsets = [0, 0, 24], sizes = [1, 8, 8], strides = [1, 1, 1]} : vector<1x8x32xf32> to vector<1x8x8xf32>
    %109 = vector.extract_strided_slice %43 {offsets = [0, 0, 24], sizes = [1, 8, 8], strides = [1, 1, 1]} : vector<1x8x32xf32> to vector<1x8x8xf32>
    %110 = vector.extract_strided_slice %44 {offsets = [0, 0, 24], sizes = [1, 8, 8], strides = [1, 1, 1]} : vector<1x8x32xf32> to vector<1x8x8xf32>
    %111 = arith.truncf %108 : vector<1x8x8xf32> to vector<1x8x8xbf16>
    %112 = arith.truncf %109 : vector<1x8x8xf32> to vector<1x8x8xbf16>
    "tpu.trace_start"() <{level = 10 : i32, message = "bnd,bmd->bnm"}> : () -> ()
    %cst_40 = arith.constant dense<0.000000e+00> : vector<1x8x8xf32>
    %113 = tpu.matmul %111, %112, %cst_40 {dimension_numbers = #tpu.dot_dimension_numbers<[2], [2], [1], [1], [0, 0, 0, 1, 1, 1], [0], [0]>} : vector<1x8x8xbf16>, vector<1x8x8xbf16>, vector<1x8x8xf32> -> vector<1x8x8xf32>
    "tpu.trace_stop"() : () -> ()
    %cst_41 = arith.constant dense<0xFF800000> : vector<1x8xf32>
    %114 = vector.multi_reduction <maximumf>, %113, %cst_41 [2] : vector<1x8x8xf32> to vector<1x8xf32>
    %115 = vector.shape_cast %114 : vector<1x8xf32> to vector<1x8x1xf32>
    %116 = vector.broadcast %115 : vector<1x8x1xf32> to vector<1x8x8xf32>
    %117 = arith.subf %113, %116 : vector<1x8x8xf32>
    %118 = math.exp %117 : vector<1x8x8xf32>
    %cst_42 = arith.constant dense<0.000000e+00> : vector<1x8xf32>
    %119 = vector.multi_reduction <add>, %118, %cst_42 [2] : vector<1x8x8xf32> to vector<1x8xf32>
    %120 = vector.shape_cast %119 : vector<1x8xf32> to vector<1x8x1xf32>
    %121 = tpu.reciprocal %120 {approx = true} : vector<1x8x1xf32> -> vector<1x8x1xf32>
    %122 = vector.broadcast %121 : vector<1x8x1xf32> to vector<1x8x8xf32>
    %123 = arith.mulf %118, %122 : vector<1x8x8xf32>
    %124 = arith.truncf %123 : vector<1x8x8xf32> to vector<1x8x8xbf16>
    %125 = arith.truncf %110 : vector<1x8x8xf32> to vector<1x8x8xbf16>
    "tpu.trace_start"() <{level = 10 : i32, message = "bnm,bmd->bnd"}> : () -> ()
    %cst_43 = arith.constant dense<0.000000e+00> : vector<1x8x8xf32>
    %126 = tpu.matmul %124, %125, %cst_43 {dimension_numbers = #tpu.dot_dimension_numbers<[2], [1], [1], [2], [0, 0, 0, 1, 1, 2], [0], [0]>} : vector<1x8x8xbf16>, vector<1x8x8xbf16>, vector<1x8x8xf32> -> vector<1x8x8xf32>
    "tpu.trace_stop"() : () -> ()
    %127 = vector.shape_cast %126 : vector<1x8x8xf32> to vector<8x8xf32>
    %c0_44 = arith.constant 0 : index
    %c24 = arith.constant 24 : index
    %128 = vector.load %arg17[%c0_44, %c24] : memref<8x32xf32, #tpu.memory_space<vmem>>, vector<8x8xf32>
    tpu.vector_store %arg17[%c0_44, %c24], %127 {strides = array<i32>} : memref<8x32xf32, #tpu.memory_space<vmem>>, vector<8x8xf32>,
    %c0_45 = arith.constant 0 : index
    %c0_46 = arith.constant 0 : index
    %129 = vector.load %arg17[%c0_45, %c0_46] : memref<8x32xf32, #tpu.memory_space<vmem>>, vector<8x32xf32>
    %c0_47 = arith.constant 0 : index
    %c0_48 = arith.constant 0 : index
    %c0_49 = arith.constant 0 : index
    %130 = vector.load %arg8[%c0_47, %c0_48, %c0_49] : memref<1x32x32xbf16, #tpu.memory_space<vmem>>, vector<1x32x32xbf16>
    %131 = vector.shape_cast %130 : vector<1x32x32xbf16> to vector<32x32xbf16>
    %132 = arith.truncf %129 : vector<8x32xf32> to vector<8x32xbf16>
    %cst_50 = arith.constant dense<0.000000e+00> : vector<8x32xf32>
    %133 = tpu.matmul %132, %131, %cst_50 {dimension_numbers = #tpu.dot_dimension_numbers<[1], [0], [0], [1], [0, 0, 1, 1], [], []>} : vector<8x32xbf16>, vector<32x32xbf16>, vector<8x32xf32> -> vector<8x32xf32>
    %c0_51 = arith.constant 0 : index
    %c0_52 = arith.constant 0 : index
    %c0_53 = arith.constant 0 : index
    %134 = vector.load %arg9[%c0_51, %c0_52, %c0_53] : memref<1x1x32xf32, #tpu.memory_space<vmem>>, vector<1x1x32xf32>
    %135 = vector.shape_cast %134 : vector<1x1x32xf32> to vector<1x32xf32>
    %136 = vector.broadcast %135 : vector<1x32xf32> to vector<8x32xf32>
    %137 = arith.addf %133, %136 : vector<8x32xf32>
    %138 = arith.addf %3, %137 : vector<8x32xf32>
    %c0_54 = arith.constant 0 : index
    %c0_55 = arith.constant 0 : index
    %c0_56 = arith.constant 0 : index
    %139 = vector.load %arg10[%c0_54, %c0_55, %c0_56] : memref<1x1x32xf32, #tpu.memory_space<vmem>>, vector<1x1x32xf32>
    %140 = vector.shape_cast %139 : vector<1x1x32xf32> to vector<1x32xf32>
    %c0_57 = arith.constant 0 : index
    %c0_58 = arith.constant 0 : index
    %c0_59 = arith.constant 0 : index
    %141 = vector.load %arg11[%c0_57, %c0_58, %c0_59] : memref<1x1x32xf32, #tpu.memory_space<vmem>>, vector<1x1x32xf32>
    %142 = vector.shape_cast %141 : vector<1x1x32xf32> to vector<1x32xf32>
    %cst_60 = arith.constant dense<0.000000e+00> : vector<8xf32>
    %143 = vector.multi_reduction <add>, %138, %cst_60 [1] : vector<8x32xf32> to vector<8xf32>
    %144 = vector.shape_cast %143 : vector<8xf32> to vector<8x1xf32>
    %cst_61 = arith.constant 3.200000e+01 : f32
    %145 = vector.broadcast %cst_61 : f32 to vector<8x1xf32>
    %146 = arith.divf %144, %145 : vector<8x1xf32>
    %147 = vector.broadcast %146 : vector<8x1xf32> to vector<8x32xf32>
    %148 = arith.subf %138, %147 : vector<8x32xf32>
    %149 = arith.mulf %148, %148 : vector<8x32xf32>
    %cst_62 = arith.constant dense<0.000000e+00> : vector<8xf32>
    %150 = vector.multi_reduction <add>, %149, %cst_62 [1] : vector<8x32xf32> to vector<8xf32>
    %151 = vector.shape_cast %150 : vector<8xf32> to vector<8x1xf32>
    %cst_63 = arith.constant 3.200000e+01 : f32
    %152 = vector.broadcast %cst_63 : f32 to vector<8x1xf32>
    %153 = arith.divf %151, %152 : vector<8x1xf32>
    %154 = vector.broadcast %146 : vector<8x1xf32> to vector<8x32xf32>
    %155 = arith.subf %138, %154 : vector<8x32xf32>
    %cst_64 = arith.constant 9.99999974E-6 : f32
    %156 = vector.broadcast %cst_64 : f32 to vector<8x1xf32>
    %157 = arith.addf %153, %156 : vector<8x1xf32>
    %158 = math.rsqrt %157 : vector<8x1xf32>
    %159 = vector.broadcast %158 : vector<8x1xf32> to vector<8x32xf32>
    %160 = arith.mulf %155, %159 : vector<8x32xf32>
    %161 = vector.broadcast %140 : vector<1x32xf32> to vector<8x32xf32>
    %162 = arith.mulf %160, %161 : vector<8x32xf32>
    %163 = vector.broadcast %142 : vector<1x32xf32> to vector<8x32xf32>
    %164 = arith.addf %162, %163 : vector<8x32xf32>
    %c0_65 = arith.constant 0 : index
    %c0_66 = arith.constant 0 : index
    %c0_67 = arith.constant 0 : index
    %165 = vector.load %arg12[%c0_65, %c0_66, %c0_67] : memref<1x32x64xbf16, #tpu.memory_space<vmem>>, vector<1x32x64xbf16>
    %166 = vector.shape_cast %165 : vector<1x32x64xbf16> to vector<32x64xbf16>
    %167 = arith.truncf %164 : vector<8x32xf32> to vector<8x32xbf16>
    %cst_68 = arith.constant dense<0.000000e+00> : vector<8x64xf32>
    %168 = tpu.matmul %167, %166, %cst_68 {dimension_numbers = #tpu.dot_dimension_numbers<[1], [0], [0], [1], [0, 0, 1, 1], [], []>} : vector<8x32xbf16>, vector<32x64xbf16>, vector<8x64xf32> -> vector<8x64xf32>
    %c0_69 = arith.constant 0 : index
    %c0_70 = arith.constant 0 : index
    %c0_71 = arith.constant 0 : index
    %169 = vector.load %arg13[%c0_69, %c0_70, %c0_71] : memref<1x1x64xf32, #tpu.memory_space<vmem>>, vector<1x1x64xf32>
    %170 = vector.shape_cast %169 : vector<1x1x64xf32> to vector<1x64xf32>
    %171 = vector.broadcast %170 : vector<1x64xf32> to vector<8x64xf32>
    %172 = arith.addf %168, %171 : vector<8x64xf32>
    %cst_72 = arith.constant 0.000000e+00 : f32
    %173 = vector.broadcast %cst_72 : f32 to vector<8x64xf32>
    %174 = arith.maximumf %172, %173 : vector<8x64xf32>
    %c0_73 = arith.constant 0 : index
    %c0_74 = arith.constant 0 : index
    %c0_75 = arith.constant 0 : index
    %175 = vector.load %arg14[%c0_73, %c0_74, %c0_75] : memref<1x64x32xbf16, #tpu.memory_space<vmem>>, vector<1x64x32xbf16>
    %176 = vector.shape_cast %175 : vector<1x64x32xbf16> to vector<64x32xbf16>
    %177 = arith.truncf %174 : vector<8x64xf32> to vector<8x64xbf16>
    %cst_76 = arith.constant dense<0.000000e+00> : vector<8x32xf32>
    %178 = tpu.matmul %177, %176, %cst_76 {dimension_numbers = #tpu.dot_dimension_numbers<[1], [0], [0], [1], [0, 0, 1, 1], [], []>} : vector<8x64xbf16>, vector<64x32xbf16>, vector<8x32xf32> -> vector<8x32xf32>
    %179 = arith.addf %138, %178 : vector<8x32xf32>
    %c0_77 = arith.constant 0 : index
    %c0_78 = arith.constant 0 : index
    %c0_79 = arith.constant 0 : index
    %180 = vector.load %arg15[%c0_77, %c0_78, %c0_79] : memref<1x1x32xf32, #tpu.memory_space<vmem>>, vector<1x1x32xf32>
    %181 = vector.shape_cast %180 : vector<1x1x32xf32> to vector<1x32xf32>
    %182 = vector.broadcast %181 : vector<1x32xf32> to vector<8x32xf32>
    %183 = arith.addf %179, %182 : vector<8x32xf32>
    %c0_80 = arith.constant 0 : index
    %c0_81 = arith.constant 0 : index
    %184 = vector.load %arg16[%c0_80, %c0_81] : memref<8x32xf32, #tpu.memory_space<vmem>>, vector<8x32xf32>
    tpu.vector_store %arg16[%c0_80, %c0_81], %183 {strides = array<i32>} : memref<8x32xf32, #tpu.memory_space<vmem>>, vector<8x32xf32>,
    return
  }
  func.func @transform_0(%arg0: i32, %arg1: i32) -> (i32, i32) {
    %c0_i32 = arith.constant 0 : i32
    %c0_i32_0 = arith.constant 0 : i32
    %c0_i32_1 = arith.constant 0 : i32
    return %c0_i32, %c0_i32_0 : i32, i32
  }
  func.func @transform_1(%arg0: i32, %arg1: i32) -> (i32, i32, i32) {
    %c0_i32 = arith.constant 0 : i32
    %c0_i32_0 = arith.constant 0 : i32
    %c0_i32_1 = arith.constant 0 : i32
    return %arg1, %c0_i32, %c0_i32_0 : i32, i32, i32
  }
  func.func @transform_2(%arg0: i32, %arg1: i32) -> (i32, i32, i32) {
    %c0_i32 = arith.constant 0 : i32
    %c0_i32_0 = arith.constant 0 : i32
    %c0_i32_1 = arith.constant 0 : i32
    return %arg1, %c0_i32, %c0_i32_0 : i32, i32, i32
  }
  func.func @transform_3(%arg0: i32, %arg1: i32) -> (i32, i32, i32) {
    %c0_i32 = arith.constant 0 : i32
    %c0_i32_0 = arith.constant 0 : i32
    %c0_i32_1 = arith.constant 0 : i32
    return %arg1, %c0_i32, %c0_i32_0 : i32, i32, i32
  }
  func.func @transform_4(%arg0: i32, %arg1: i32) -> (i32, i32, i32) {
    %c0_i32 = arith.constant 0 : i32
    %c0_i32_0 = arith.constant 0 : i32
    %c0_i32_1 = arith.constant 0 : i32
    return %arg1, %c0_i32, %c0_i32_0 : i32, i32, i32
  }
  func.func @transform_5(%arg0: i32, %arg1: i32) -> (i32, i32, i32) {
    %c0_i32 = arith.constant 0 : i32
    %c0_i32_0 = arith.constant 0 : i32
    %c0_i32_1 = arith.constant 0 : i32
    return %arg1, %c0_i32, %c0_i32_0 : i32, i32, i32
  }
  func.func @transform_6(%arg0: i32, %arg1: i32) -> (i32, i32, i32) {
    %c0_i32 = arith.constant 0 : i32
    %c0_i32_0 = arith.constant 0 : i32
    %c0_i32_1 = arith.constant 0 : i32
    return %arg1, %c0_i32, %c0_i32_0 : i32, i32, i32
  }
  func.func @transform_7(%arg0: i32, %arg1: i32) -> (i32, i32, i32) {
    %c0_i32 = arith.constant 0 : i32
    %c0_i32_0 = arith.constant 0 : i32
    %c0_i32_1 = arith.constant 0 : i32
    return %arg1, %c0_i32, %c0_i32_0 : i32, i32, i32
  }
  func.func @transform_8(%arg0: i32, %arg1: i32) -> (i32, i32, i32) {
    %c0_i32 = arith.constant 0 : i32
    %c0_i32_0 = arith.constant 0 : i32
    %c0_i32_1 = arith.constant 0 : i32
    return %arg1, %c0_i32, %c0_i32_0 : i32, i32, i32
  }
  func.func @transform_9(%arg0: i32, %arg1: i32) -> (i32, i32, i32) {
    %c0_i32 = arith.constant 0 : i32
    %c0_i32_0 = arith.constant 0 : i32
    %c0_i32_1 = arith.constant 0 : i32
    return %arg1, %c0_i32, %c0_i32_0 : i32, i32, i32
  }
  func.func @transform_10(%arg0: i32, %arg1: i32) -> (i32, i32, i32) {
    %c0_i32 = arith.constant 0 : i32
    %c0_i32_0 = arith.constant 0 : i32
    %c0_i32_1 = arith.constant 0 : i32
    return %arg1, %c0_i32, %c0_i32_0 : i32, i32, i32
  }
  func.func @transform_11(%arg0: i32, %arg1: i32) -> (i32, i32, i32) {
    %c0_i32 = arith.constant 0 : i32
    %c0_i32_0 = arith.constant 0 : i32
    %c0_i32_1 = arith.constant 0 : i32
    return %arg1, %c0_i32, %c0_i32_0 : i32, i32, i32
  }
  func.func @transform_12(%arg0: i32, %arg1: i32) -> (i32, i32, i32) {
    %c0_i32 = arith.constant 0 : i32
    %c0_i32_0 = arith.constant 0 : i32
    %c0_i32_1 = arith.constant 0 : i32
    return %arg1, %c0_i32, %c0_i32_0 : i32, i32, i32
  }
  func.func @transform_13(%arg0: i32, %arg1: i32) -> (i32, i32, i32) {
    %c0_i32 = arith.constant 0 : i32
    %c0_i32_0 = arith.constant 0 : i32
    %c0_i32_1 = arith.constant 0 : i32
    return %arg1, %c0_i32, %c0_i32_0 : i32, i32, i32
  }
  func.func @transform_14(%arg0: i32, %arg1: i32) -> (i32, i32) {
    %c0_i32 = arith.constant 0 : i32
    %c0_i32_0 = arith.constant 0 : i32
    return %arg0, %c0_i32 : i32, i32
  }
}

</mosaic_0001>

<bundles_post_ra>
// kernel: tpu_custom_call.1
= control target key start
LH: loop header
LB: loop body
LE: loop exit
PB: predicated region body
PF: predicated region fallthrough
CT: control target
= control target key end

     0   :  { %s3129_s0 = inlined_call_operand.hbm [shape: f32[16,32], index: 0, kind: input, shape index: {}]   ;;  %s3130_s1 = inlined_call_operand.hbm [shape: f32[2,1,32], index: 1, kind: input, shape index: {}]   ;;  %s3131_s2 = inlined_call_operand.vmem [shape: f32[2,1,32], index: 2, kind: input, shape index: {}]   ;;  %s3132_s3 = inlined_call_operand.vmem [shape: bf16[2,32,32], index: 3, kind: input, shape index: {}]   ;;  %s3133_s4 = inlined_call_operand.vmem [shape: bf16[2,32,32], index: 4, kind: input, shape index: {}]   ;;  %s3134_s5 = inlined_call_operand.vmem [shape: bf16[2,32,32], index: 5, kind: input, shape index: {}]   ;;  %s3135_s6 = inlined_call_operand.hbm [shape: bf16[2,32,32], index: 6, kind: input, shape index: {}]   ;;  %s3136_s7 = inlined_call_operand.vmem [shape: f32[2,1,32], index: 7, kind: input, shape index: {}]   ;;  %s3137_s8 = inlined_call_operand.vmem [shape: f32[2,1,32], index: 8, kind: input, shape index: {}]   ;;  %s3138_s9 = inlined_call_operand.vmem [shape: f32[2,1,32], index: 9, kind: input, shape index: {}]   ;;  %s3139_s10 = inlined_call_operand.hbm [shape: bf16[2,32,64], index: 10, kind: input, shape index: {}]   ;;  %s3140_s11 = inlined_call_operand.vmem [shape: f32[2,1,64], index: 11, kind: input, shape index: {}]   ;;  %s3141_s12 = inlined_call_operand.vmem [shape: bf16[2,64,32], index: 12, kind: input, shape index: {}]   ;;  %s3142_s13 = inlined_call_operand.vmem [shape: f32[2,1,32], index: 13, kind: input, shape index: {}]   ;;  %s3143_s14 = inlined_call_operand.hbm [shape: f32[16,32], index: 14, kind: output, shape index: {}]  }
   0x1   :  { %3164 = sst [smem:[#allocation31_spill]] %s3129_s0 }
   0x2   :  { %3165 = sst [smem:[#allocation32_spill]] %s3130_s1 }
   0x3   :  { %3166 = sst [smem:[#allocation33_spill]] %s3132_s3 }
   0x4   :  { %3167 = sst [smem:[#allocation34_spill]] %s3133_s4 }
   0x5   :  { %3168 = sst [smem:[#allocation35_spill]] %s3134_s5 }
   0x6   :  { %3169 = sst [smem:[#allocation36_spill]] %s3135_s6 }
   0x7   :  { %3170 = sst [smem:[#allocation37_spill]] %s3136_s7 }
   0x8   :  { %3171 = sst [smem:[#allocation38_spill]] %s3137_s8 }
   0x9   :  { %3172 = sst [smem:[#allocation39_spill]] %s3138_s9 }
   0xa   :  { %3173 = sst [smem:[#allocation40_spill]] %s3139_s10 }
   0xb   :  { %3174 = sst [smem:[#allocation41_spill]] %s3140_s11 }
   0xc   :  { %3175 = sst [smem:[#allocation42_spill]] %s3141_s12 }
   0xd   :  { %3176 = sst [smem:[#allocation43_spill]] %s3142_s13 }
   0xe   :  { %3177 = sst [smem:[#allocation44_spill]] %s3143_s14 }
   0xf   :  { %19 = vsyncpa [#allocation4], 0 }
  0x10   :  { %20 = vsyncpa [#allocation7], 0 }
  0x11   :  { %22 = vsyncpa [#allocation7 + $0x1], 0 }
  0x12   :  { %23 = vsyncpa [#allocation10], 0 }
  0x13   :  { %25 = vsyncpa [#allocation10 + $0x1], 0 }
  0x14   :  { %26 = vsyncpa [#allocation5], 0 }
  0x15   :  { %28 = vsyncpa [#allocation5 + $0x1], 0  ;;  %s2636_s29 = smov 0   ;;  %s2638_s30 = smov 0  }
  0x16   :  { %s2640_s15 = smov 0   ;;  %s2642_s16 = smov 0  }
  0x17   :  { %s2644_s17 = smov 0   ;;  %s2646_s18 = smov 0  }
  0x18   :  { %s2648_s19 = smov 0   ;;  %s2650_s20 = smov 0  }
  0x19   :  { %s2652_s21 = smov 0   ;;  %s2654_s22 = smov 0  }
  0x1a   :  { %s2656_s23 = smov 0  }
  0x1b LB: > { %3178 = sst [smem:[#allocation16_spill]] %s2502_s29  ;;  %s43_s24 = sadd.s32 1, %s2534_s21  ;;  %s2542_s23 = sphi %s2656_s23, %s34_s23   ;;  %s2538_s22 = sphi %s2654_s22, %s3245_s22   ;;  %s2534_s21 = sphi %s2652_s21, %s3244_s21   ;;  %s2530_s20 = sphi %s2650_s20, %s3243_s20   ;;  %s2526_s19 = sphi %s2648_s19, %s3242_s19   ;;  %s2522_s18 = sphi %s2646_s18, %s3241_s18   ;;  %s2518_s17 = sphi %s2644_s17, %s3240_s17   ;;  %s2514_s16 = sphi %s2642_s16, %s3239_s16   ;;  %s2510_s15 = sphi %s2640_s15, %s3238_s15   ;;  %s2506_s30 = sphi %s2638_s30, %s3237_s30   ;;  %s2502_s29 = sphi %s2636_s29, %s3236_s29  }
  0x1c   : > { %3179 = sst [smem:[#allocation17_spill]] %s2506_s30  ;;  %s46_s25 = sadd.s32 1, %s2538_s22 }
  0x1d   : > { %3180 = sst [smem:[#allocation18_spill]] %s2510_s15  ;;  %p44_p0 = scmp.ge.s32.totalorder %s43_s24, 2 }
  0x1e   : > { %3181 = sst [smem:[#allocation19_spill]] %s2518_s17  ;;  %s74_s26 = sadd.s32 1, %s2522_s18 }
  0x1f   : > { %3182 = sst [smem:[#allocation20_spill]] %s2522_s18  ;;  %p81_p1 = scmp.ne.s32.totalorder %s2522_s18, %s2518_s17 }
  0x20   : > { %3183 = sst [smem:[#allocation21_spill]] %s2530_s20  ;;  %p82_p2 = scmp.eq.s32.totalorder %s2542_s23, 0 }
  0x21   : > { %3184 = sst [smem:[#allocation22_spill]] %s2534_s21  ;;  %s3247_s24 = smov (%p44_p0, %s43_s24), 0 }
  0x22   : > { %3185 = sst [smem:[#allocation23_spill]] %s2538_s22  ;;  %s3249_s25 = smov (!%p44_p0, %s46_s25), %s2538_s22 }
  0x23   : > { %3186 = sst [smem:[#allocation24_spill]] %s2542_s23  ;;  %s71_s27 = ssub.s32 %s2534_s21, %s3247_s24 }
  0x24   : > { %3187 = sst [smem:[#allocation25_spill]] %s3247_s24  ;;  %p2702_p3 = por %p82_p2, %p81_p1 }
  0x25   : > { %p48_p4 = scmp.ge.s32.totalorder %s3249_s25, 2  ;;  %p72_p5 = scmp.eq.s32.totalorder %s71_s27, 0 }
  0x26   : > { %p2166_p6 = scmp.lt.s32.totalorder %s2542_s23, 4  ;;  %s462_s13 = sand.u32 1, %s2542_s23  }
  0x27   : > { %s3251_s25 = smov (%p48_p4, %s3249_s25), 0  ;;  %s2720_s24 = sand.u32 1, %s2522_s18  }
  0x28   : > { %3189 = sst [smem:[#allocation26_spill]] %s3251_s25  ;;  %s409_s20 = ssub.s32 %s2538_s22, %s3251_s25 }
  0x29   : > { %s2710_s14 = scalar_select %p72_p5, %s2522_s18, %s74_s26  }
  0x2a   : > { %p2715_p7 = scmp.eq.s32.totalorder %s409_s20, 0  ;;  %s1932_s11 = sshll.u32 %s2534_s21, 4 }
  0x2b   : > { %3190 = sst [smem:[#allocation27_spill]] %s2710_s14  ;;  %s465_s7 = scalar_lea.vmem [#allocation6], %s2720_s24 }
  0x2c   : > { %s3192_s1 = sld [smem:[#allocation32_spill]]  ;;  %s472_s5 = sshll.u32 %s465_s7, 4  ;;  %s473_s5 = int_to_ptr.vmem [resolvable:$true] %s472_s5 }
  0x2d   : > { %p2729_p8 = pnand %p2166_p6, %p2702_p3  ;;  %s3148_s20 = sshll.u32 %s2720_s24, 4 }
  0x2e   : > { %s2734_s25 = scalar_lea.sflag [#allocation7], %s462_s13  ;;  %s2317_s22 = scalar_lea.vmem %s473_s5, 16 }
  0x2f   : > { %p3149_p9 = pneg %p2729_p8  ;;  %p2318_p10 = scmp.ne.s32.totalorder %s473_s5, %s2317_s22 }
  0x30   : > { %s2544_s7 = smov [#allocation6]  }
  0x31   : > { %p2320_p11 = pnand %p2318_p10, %p3149_p9  ;;  %s2322_s8 = sshll.u32 %s2544_s7, 4  ;;  %s2323_s8 = int_to_ptr.vmem [resolvable:$false] %s2322_s8 }
  0x32   : > { %s470_s27 = scalar_lea.hbm %s3192_s1, %s1932_s11  ;;  %s2324_s9 = scalar_lea.vmem %s2323_s8, 32 }
  0x33   : > { %p2321_p12 = pneg %p2320_p11  ;;  %p2325_p13 = scmp.lt.s32.totalorder %s473_s5, %s2323_s8 }
  0x34   : > { %p2326_p0 = scmp.lt.s32.totalorder %s2324_s9, %s2317_s22 }
  0x36   : > { %p2327_p1 = por %p2326_p0, %p2325_p13 }
  0x38   : > { %p2328_p2 = pnand %p2327_p1, %p2321_p12 }
  0x3a   : > { %2331 = shalt.err (!%p2328_p2)
}
  0x3b   : > { %2154 = dma.hbm_to_vmem [thread:$0]  (!%p2729_p8), %s470_s27, 16, %s473_s5, %s2734_s25  }
  0x3c   : > { %s3151_s11 = sshll.u32 %s2534_s21, 8  ;;  %s513_s13 = scalar_lea.vmem [#allocation8], %s3148_s20 }
  0x3d   : > { %s520_s22 = sshll.u32 %s513_s13, 4  ;;  %s2750_s28 = sadd.s32 4294967295, %s2542_s23   ;;  %s2747_s22 = int_to_ptr.vmem [resolvable:$true] %s520_s22 }
  0x3e   : > { %s1928_s7 = sadd.s32 4294967294, %s2542_s23   ;;  %p87_p3 = scmp.ne.s32.totalorder %s2518_s17, %s2514_s16 }
  0x3f   : > { %p88_p4 = scmp.eq.s32.totalorder %s2750_s28, 0  ;;  %s412_s8 = sadd.s32 1, %s2510_s15 }
  0x40   : > { %s2760_s5 = scalar_select %p2715_p7, %s2510_s15, %s412_s8  }
  0x41   : > { %p2764_p5 = por %p88_p4, %p87_p3  ;;  %p422_p6 = scmp.ne.s32.totalorder %s2510_s15, %s2506_s30 }
  0x42   : > { %3194 = sst [smem:[#allocation28_spill]] %s2760_s5  ;;  %p423_p10 = scmp.eq.s32.totalorder %s2750_s28, 3 }
  0x43   : > { %p428_p11 = scmp.ne.s32.totalorder %s2506_s30, %s2502_s29  ;;  %p429_p12 = scmp.eq.s32.totalorder %s1928_s7, 3 }
  0x44   : > { %p1929_p13 = scmp.ge.s32.totalorder %s2542_s23, 1  ;;  %p2774_p0 = por %p423_p10, %p422_p6 }
  0x45   : > { %p436_p1 = scmp.lt.s32.totalorder %s2542_s23, 5  ;;  %p2779_p2 = por %p429_p12, %p428_p11 }
  0x46   : > { %s3196_s9 = scalar_select %p2774_p0, 1, 0 }
  0x47   : > { %s3198_s12 = scalar_select %p2779_p2, 1, 0 }
  0x48   : > { %3197 = sst [smem:[#allocation29_spill]] %s3196_s9  ;;  %p2783_p7 = pnand %p1929_p13, %p436_p1 }
  0x49   : > { %3199 = sst [smem:[#allocation30_spill]] %s3198_s12  ;;  %s2545_s13 = smov [#allocation3]  }
  0x4a   : > { %s448_s8 = sshll.u32 %s2545_s13, 4  ;;  %p2147_p3 = pneg %p2783_p7  ;;  %s449_s8 = int_to_ptr.vmem [resolvable:$true] %s448_s8 }
  0x4b   : > { %s3201_s6 = sld [smem:[#allocation36_spill]]  ;;  %s2343_s14 = scalar_lea.vmem %s449_s8, 256 }
  0x4c   : > { %p2148_p6 = pnand %p2147_p3, %p88_p4  ;;  %p2344_p11 = scmp.ne.s32.totalorder %s449_s8, %s2343_s14 }
  0x4d   : > { %p2351_p1 = scmp.lt.s32.totalorder %s449_s8, %s449_s8  ;;  %p2352_p9 = scmp.lt.s32.totalorder %s2343_s14, %s2343_s14 }
  0x4e   : > { %p2334_p10 = pneg %p2148_p6 }
  0x4f   : > { %p2353_p2 = por %p2352_p9, %p2351_p1 }
  0x50   : > { %p2346_p12 = pnand %p2344_p11, %p2334_p10 }
  0x51   : > { %s2794_s1 = scalar_lea.hbm %s3201_s6, %s3151_s11 }
  0x52   : > { %p2347_p13 = pneg %p2346_p12 }
  0x54   : > { %p2354_p0 = pnand %p2353_p2, %p2347_p13 }
  0x56   : > { %2357 = shalt.err (!%p2354_p0)
}
  0x57   : > { %s2546_s13 = smov 128   ;;  %s2547_s20 = smov 8  }
  0x58   : > { %s3202_s0 = sld [smem:[#allocation31_spill]]  ;;  %s2371_s6 = scalar_lea.vmem %s2747_s22, 256 }
  0x59   : > { %p2372_p3 = scmp.ne.s32.totalorder %s2747_s22, %s2371_s6  ;;  %p3203_p10 = pneg %p2729_p8 }
  0x5a   : > { %s2548_s14 = smov [#allocation8]  }
  0x5b   : > { %p2374_p11 = pnand %p2372_p3, %p3203_p10  ;;  %s2376_s18 = sshll.u32 %s2548_s14, 4  ;;  %s2377_s18 = int_to_ptr.vmem [resolvable:$false] %s2376_s18 }
  0x5c   : > { %s2378_s5 = scalar_lea.vmem %s2377_s18, 512  ;;  %p2379_p9 = scmp.lt.s32.totalorder %s2747_s22, %s2377_s18 }
  0x5d   : > { %p2375_p12 = pneg %p2374_p11  ;;  %p2380_p0 = scmp.lt.s32.totalorder %s2378_s5, %s2371_s6 }
  0x5e   : > { %2150 = dma.hbm_to_vmem [thread:$0]  (!%p2148_p6), %s3202_s0, 256, %s449_s8, [#allocation4], %s2546_s13, %s2546_s13, %s2547_s20  }
  0x5f   : > { %p2381_p2 = por %p2380_p0, %p2379_p9 }
  0x61   : > { %p2382_p13 = pnand %p2381_p2, %p2375_p12 }
  0x63   : > { %2385 = shalt.err (!%p2382_p13)
}
  0x64   : > { %s2549_s15 = smov 64   ;;  %s2550_s11 = smov 4  }
  0x65   : > { %2157 = dma.hbm_to_vmem [thread:$0]  (!%p2729_p8), %s2794_s1, 256, %s2747_s22, %s2734_s25, %s2549_s15, %s2549_s15, %s2550_s11  }
  0x66   : > { %s3204_s8 = sshll.u32 %s2534_s21, 8  ;;  %s3205_s10 = sld [smem:[#allocation40_spill]] }
  0x67   : > { %s3206_s18 = sshll.u32 %s2720_s24, 4  ;;  %s549_s14 = scalar_lea.sflag [#allocation10], %s2720_s24 }
  0x68   : > { %s552_s5 = scalar_lea.vmem [#allocation9], %s3206_s18  ;;  %p3207_p1 = pmov %p3203_p10 }
  0x69   : > { %s559_s7 = sshll.u32 %s552_s5, 4  ;;  %s2551_s12 = smov [#allocation9]   ;;  %s560_s7 = int_to_ptr.vmem [resolvable:$true] %s559_s7 }
  0x6a   : > { %s2399_s0 = scalar_lea.vmem %s560_s7, 256  ;;  %s2404_s29 = sshll.u32 %s2551_s12, 4  ;;  %s2405_s29 = int_to_ptr.vmem [resolvable:$false] %s2404_s29 }
  0x6b   : > { %p2400_p6 = scmp.ne.s32.totalorder %s560_s7, %s2399_s0  ;;  %s2406_s1 = scalar_lea.vmem %s2405_s29, 512 }
  0x6c   : > { %s558_s6 = scalar_lea.hbm %s3205_s10, %s3204_s8  ;;  %p2407_p11 = scmp.lt.s32.totalorder %s560_s7, %s2405_s29 }
  0x6d   : > { %p2402_p3 = pnand %p2400_p6, %p3207_p1  ;;  %p2408_p12 = scmp.lt.s32.totalorder %s2406_s1, %s2399_s0 }
  0x6f   : > { %p2403_p10 = pneg %p2402_p3  ;;  %p2409_p9 = por %p2408_p12, %p2407_p11 }
  0x71   : > { %p2410_p0 = pnand %p2409_p9, %p2403_p10 }
  0x73   : > { %2413 = shalt.err (!%p2410_p0)
}
  0x74   : > { %2160 = dma.hbm_to_vmem [thread:$0]  (!%p2729_p8), %s558_s6, 256, %s560_s7, %s549_s14, %s2549_s15, %s2549_s15, %s2550_s11  }
  0x75   : > { %591 = sbr.rel (%p2783_p7) target bundleno = 2579 (0xa13), region = 76 }
  0x7a   : > { %2485 = dma.done.wait (%p88_p4), [#allocation4], 256  }
  0x7b   : > { %2487 = vsyncadd (%p88_p4), [#allocation4], 4294967040  ;;  %s597_s29 = sand.u32 1, %s2750_s28   ;;  %s2833_s0 = sand.u32 1, %s2518_s17  }
  0x7c   : > { %s598_s24 = scalar_lea.sflag [#allocation7], %s597_s29 }
  0x7d   : > { %2489 = dma.done.wait (%p2764_p5), %s598_s24, 272  }
  0x7e   : > { %2491 = vsyncadd (%p2764_p5), %s598_s24, 4294967024  ;;  %s1941_s15 = sshll.u32 %s2833_s0, 4  ;;  %s615_s22 = scalar_lea.sflag [#allocation10], %s2833_s0 }
  0x7f   : > { %s2841_s26 = scalar_lea.vmem [#allocation8], %s1941_s15  ;;  %s2844_s12 = scalar_lea.vmem [#allocation9], %s1941_s15 }
  0x80   : > { %2493 = dma.done.wait (%p2764_p5), %s615_s22, 256  }
  0x81   : > { %2495 = vsyncadd (%p2764_p5), %s615_s22, 4294967040  ;;  %s3156_s28 = sand.u32 1, %s2506_s30   ;;  %p710_p8 = scmp.lt.s32.totalorder %s2526_s19, 1 }
  0x82   : > { %s1943_s16 = sshll.u32 %s3156_s28, 3  ;;  %s3208_s3 = sld [smem:[#allocation33_spill]] }
  0x83   : > { %s2855_s11 = scalar_select %p710_p8, %s2526_s19, 1 }
  0x84   : > { %s3209_s4 = sld [smem:[#allocation34_spill]]  ;;  %s2903_s10 = scalar_lea.vmem [#allocation11], %s1943_s16 }
  0x85   : > { %s1995_s20 = sshll.u32 %s2855_s11, 4  ;;  %s3210_s15 = sld [smem:[#allocation35_spill]] }
  0x86   : > { %s3212_s21 = sld [smem:[#allocation38_spill]]  ;;  %s1998_s30 = sshll.u32 %s2855_s11, 5 }
  0x87   : > { %s3213_s17 = sld [smem:[#allocation39_spill]]  ;;  %p1952_p4 = scmp.ne.s32.totalorder %s2526_s19, 0 }
  0x88   : > { %s2865_s5 = scalar_lea.vmem %s3208_s3, %s1995_s20  ;;  %s3215_s24 = sld [smem:[#allocation42_spill]] }
  0x89   : > { %s3216_s13 = sld [smem:[#allocation43_spill]] }
  0x8a   : > { %s2870_s1 = scalar_lea.vmem %s3209_s4, %s1995_s20  ;;  %s3214_s4 = sld [smem:[#allocation41_spill]] }
  0x8b   : > { %s2875_s22 = scalar_lea.vmem %s3210_s15, %s1995_s20  ;;  %s3217_s3 = sld [smem:[#allocation21_spill]] (!%p1952_p4) }
  0x8c   : > { %s733_s6 = scalar_lea.vmem %s3212_s21, %s2855_s11  ;;  %752 = sbr.rel (%p1952_p4) target bundleno = 149 (0x95), region = 96 }
  0x8d   : > { %s736_s23 = scalar_lea.vmem %s3213_s17, %s2855_s11 }
  0x8e   : > { %s2897_s15 = scalar_lea.vmem %s3215_s24, %s1998_s30 }
  0x8f   : > { %s747_s27 = scalar_lea.vmem %s3216_s13, %s2855_s11 }
  0x90   : > { %s739_s9 = scalar_lea.vmem %s3214_s4, %s2855_s11 }
  0x91   : > { %s1953_s17 = sshll.u32 %s3217_s3, 3  ;;  %vm756_vm0 = vcmask 261120  }
  0x92   : > { %s754_s4 = scalar_lea.vmem [#allocation3], %s1953_s17 }
  0x93   : > { %v755_v0 = vld [vmem:[%s754_s4] sm:$0xff] }
  0x94   : > { %757 = vst.msk [vmem:[%s2903_s10] sm:$0xff] %vm756_vm0, %v755_v0 }
  0x95 PF: > { %vm761_vm1 = vcmask 261120   ;;  %v2270_v8 = vld [vmem:[%s2865_s5 + $0x8] sm:$0xff]   ;;  %v2552_v10 = vmov 0.0   ;;  %v2272_v11 = vld [vmem:[%s2865_s5] sm:$0xff]   ;;  %vm2553_vm2 = vmmov 0   ;;  %s3218_s30 = scalar_lea.vmem [#allocation6], %s2833_s0  ;;  %s3219_s25 = scalar_lea.vmem %s3131_s2, %s2855_s11 }
  0x96   : > { %v2271_v9 = vld [vmem:[%s2870_s1 + $0x8] sm:$0xff]   ;;  %2035 = vmatprep.subr.bf16.mxu0 %v2552_v10  ;;  %2043 = vmatprep.subr.bf16.mxu1 %v2552_v10  ;;  %v2273_v12 = vld [vmem:[%s2870_s1] sm:$0xff]   ;;  %vm964_vm3 = vcmask 64512   ;;  %s2554_s0 = smov 112   ;;  %s2555_s16 = smov 120   ;;  %vm1027_vm4 = vcmask 1043456  }
  0x97   : > { %2036 = vmatpush3.bf16.msra.mxu0 %v2270_v8  ;;  %2044 = vmatpush3.bf16.msra.mxu1 %v2271_v9  ;;  %v1954_v17 = vld [vmem:[%s3218_s30] ss:$0 sm:$0xff]  ;;  %v2274_v22 = vld [vmem:[%s2875_s22 + $0x8] sm:$0xff]   ;;  %s2556_s5 = smov 104   ;;  %s2557_s1 = smov 8   ;;  %vm1189_vm5 = vcmask 130112  }
  0x98   : > { %2037 = vmatprep.subr.bf16.mxu0 %v2552_v10  ;;  %2045 = vmatprep.subr.bf16.mxu1 %v2552_v10  ;;  %v1955_v19 = vld [vmem:[%s3219_s25] ss:$0 sm:$0xff]  ;;  %s2559_s18 = smov 24   ;;  %vm1305_vm6 = vcmask 195712   ;;  %vm1421_vm7 = vcmask 261312   ;;  %s3220_s14 = sld [smem:[#allocation37_spill]] }
  0x99   : > { %2039 = vmatprep.mubr.msk.bf16.mxu0 %vm2553_vm2, %v2552_v10  ;;  %2047 = vmatprep.mubr.msk.bf16.mxu1 %vm2553_vm2, %v2552_v10  ;;  %v2275_v24 = vld [vmem:[%s2875_s22] sm:$0xff]   ;;  %s2558_s22 = smov 16   ;;  %s3224_s3 = sld [smem:[#allocation21_spill]]  ;;  %vm1622_vm8 = vcmask 523264  }
  0x9a   : > { %s3227_s30 = sld [smem:[#allocation29_spill]] }
  0x9b   : > { %v2909_v1 = vld [vmem:[%s2903_s10] sm:$0xff]  ;;  %2038 = vmatpush3.bf16.msra.mxu0 %v2272_v11  ;;  %2046 = vmatpush3.bf16.msra.mxu1 %v2273_v12 }
  0x9c   : > { %v762_v2 = vsel %vm761_vm1, %v2909_v1, 0.0  ;;  %2051 = vmatprep.subr.bf16.mxu0 %v2552_v10  ;;  %2059 = vmatprep.subr.bf16.mxu1 %v2552_v10 }
  0x9d   : > { %763 = vadd.xlane.f32.xlu0 %v762_v2 }
  0x9e   : > { %s3221_s29 = scalar_lea.vmem %s3220_s14, %s2855_s11 }
  0x9f   : > { %s1990_s25 = sshll.u32 %s3224_s3, 7 }
  0xa0   : > { %p3231_p7 = scmp.ne.s32.totalorder %s3227_s30, 0 }
 0x126   : > { %v764_v3 = vpop.xlane.xlu0 %763 }
 0x127   : > { %v766_v4 = vmul.f32 0.03125, %v764_v3 }
 0x129   : > { %v767_v5 = vsub.f32 %v2909_v1, %v766_v4 }
 0x12b   : > { %v768_v6 = vmul.f32 %v767_v5, %v767_v5 }
 0x12d   : > { %v769_v7 = vsel %vm761_vm1, %v768_v6, 0.0 }
 0x12e   : > { %770 = vadd.xlane.f32.xlu0 %v769_v7 }
 0x1b7   : > { %v771_v13 = vpop.xlane.xlu0 %770 }
 0x1b8   : > { %v772_v14 = vmul.f32 0.03125, %v771_v13 }
 0x1ba   : > { %v773_v15 = vadd.f32 1e-05, %v772_v14 }
 0x1bc   : > { %2284 = vrsqrt.f32 %v773_v15 }
 0x1c9   : > { %v2285_v16 = vpop.eup %2284 }
 0x1ca   : > { %v775_v18 = vmul.f32 %v2285_v16, %v767_v5 }
 0x1cc   : > { %v782_v20 = vmul.f32 %v1954_v17, %v775_v18 }
 0x1ce   : > { %v789_v21 = vadd.f32 %v1955_v19, %v782_v20 }
 0x1d0   : > { %v794_v23 = vpack.c.bf16 %v789_v21, %v789_v21 }
 0x1d2   : > { %2040 = vmatmul.mubr.msk.bf16.vlgmr.msra.gmra.mxu0 %vm761_vm1, %v794_v23  ;;  %2048 = vmatmul.mubr.msk.bf16.vlgmr.msra.gmra.mxu1 %vm761_vm1, %v794_v23 }
 0x1d3   : > { %2052 = vmatpush3.bf16.msra.mxu0 %v2274_v22  ;;  %2055 = vmatprep.mubr.msk.bf16.mxu0 %vm2553_vm2, %v2552_v10 }
 0x1d4   : > { %2053 = vmatprep.subr.bf16.mxu0 %v2552_v10  ;;  %2061 = vmatprep.mubr.msk.bf16.mxu1 %vm2553_vm2, %v2552_v10 }
 0x1d7   : > { %2054 = vmatpush3.bf16.msra.mxu0 %v2275_v24 }
 0x1d8   : > { %2065 = vmatprep.subr.bf16.mxu0 %v2552_v10 }
 0x1da   : > { %2056 = vmatmul.mubr.msk.bf16.vlgmr.msra.gmra.mxu0 %vm761_vm1, %v794_v23 }
 0x1db   : > { %2067 = vmatprep.mubr.msk.bf16.mxu0 %vm2553_vm2, %v2552_v10 }
 0x292   : > { %v844_v25 = vpop.f32.mrf.mxu0  ;;  %v900_v26 = vpop.f32.mrf.mxu1 }
 0x293   : > { %v963_v27 = vpack.c.bf16 %v900_v26, %v900_v26  ;;  %v962_v33 = vpack.c.bf16 %v844_v25, %v844_v25 }
 0x294   : > { %v2041_v28 = vpop.f32.mrf.mxu0  ;;  %v2049_v29 = vpop.f32.mrf.mxu1 }
 0x295   : > { %1193 = vrot.lane.b32.xlu0 %v963_v27, %s2554_s0  ;;  %1076 = vrot.lane.b32.xlu1 %v963_v27, %s2555_s16  ;;  %v969_v30 = vsel %vm964_vm3, %v963_v27, 0 }
 0x296   : > { %v847_v31 = vpop.f32.mrf.mxu0  ;;  %v903_v32 = vpop.f32.mrf.mxu1  ;;  %2060 = vmatpush3.bf16.xpose.msra.mxu1 %v969_v30 }
 0x297   : > { %2071 = vmatprep.subr.bf16.mxu1 %v2552_v10 }
 0x298   : > { %v2042_v34 = vpop.f32.mrf.mxu0  ;;  %v2050_v35 = vpop.f32.mrf.mxu1 }
 0x299   : > { %1073 = vrot.lane.b32.xlu1 %v962_v33, %s2555_s16 }
 0x29a   : > { %v956_v36 = vpop.f32.mrf.mxu0 }
 0x29b   : > { %v2954_v37 = vpack.c.bf16 %v956_v36, %v956_v36 }
 0x29c   : > { %v2057_v38 = vpop.f32.mrf.mxu0 }
 0x29d   : > { %1191 = vrot.lane.b32.xlu1 %v962_v33, %s2554_s0  ;;  %2062 = vmatmul.mubr.msk.bf16.vlgmr.msra.gmra.mxu1 %vm964_vm3, %v962_v33  ;;  %v1029_v39 = vsel %vm1027_vm4, %v2954_v37, 0 }
 0x29e   : > { %v959_v40 = vpop.f32.mrf.mxu0  ;;  %2066 = vmatpush3.bf16.msra.mxu0 %v1029_v39  ;;  %2073 = vmatprep.mubr.msk.bf16.mxu1 %vm2553_vm2, %v2552_v10 }
 0x29f   : > { %2077 = vmatprep.subr.bf16.mxu0 %v2552_v10 }
 0x2a0   : > { %v2058_v41 = vpop.f32.mrf.mxu0 }
 0x2a1   : > { %1309 = vrot.lane.b32.xlu1 %v963_v27, %s2556_s5 }
 0x2a5   : > { %1307 = vrot.lane.b32.xlu1 %v962_v33, %s2556_s5 }
 0x307   : > { %v1077_v42 = vpop.permute.xlu1 %1076  ;;  %v1194_v45 = vpop.permute.xlu0 %1193 }
 0x308   : > { %v1082_v43 = vsel %vm964_vm3, %v1077_v42, 0  ;;  %v1199_v47 = vsel %vm964_vm3, %v1194_v45, 0 }
 0x309   : > { %2072 = vmatpush3.bf16.xpose.msra.mxu1 %v1082_v43 }
 0x30a   : > { %2083 = vmatprep.subr.bf16.mxu1 %v2552_v10 }
 0x30b   : > { %v1074_v44 = vpop.permute.xlu1 %1073 }
 0x30f   : > { %v1192_v46 = vpop.permute.xlu1 %1191 }
 0x310   : > { %2074 = vmatmul.mubr.msk.bf16.vlgmr.msra.gmra.mxu1 %vm964_vm3, %v1074_v44 }
 0x311   : > { %2084 = vmatpush3.bf16.xpose.msra.mxu1 %v1199_v47  ;;  %2085 = vmatprep.mubr.msk.bf16.mxu1 %vm2553_vm2, %v2552_v10 }
 0x312   : > { %2095 = vmatprep.subr.bf16.mxu1 %v2552_v10 }
 0x313   : > { %v1310_v48 = vpop.permute.xlu1 %1309 }
 0x314   : > { %v1315_v49 = vsel %vm964_vm3, %v1310_v48, 0 }
 0x317   : > { %v1308_v50 = vpop.permute.xlu1 %1307 }
 0x318   : > { %2086 = vmatmul.mubr.msk.bf16.vlgmr.msra.gmra.mxu1 %vm964_vm3, %v1192_v46 }
 0x319   : > { %2096 = vmatpush3.bf16.xpose.msra.mxu1 %v1315_v49  ;;  %2097 = vmatprep.mubr.msk.bf16.mxu1 %vm2553_vm2, %v2552_v10 }
 0x31a   : > { %2107 = vmatprep.subr.bf16.mxu1 %v2552_v10 }
 0x320   : > { %2098 = vmatmul.mubr.msk.bf16.vlgmr.msra.gmra.mxu1 %vm964_vm3, %v1308_v50 }
 0x321   : > { %2111 = vmatprep.mubr.msk.bf16.mxu1 %vm2553_vm2, %v2552_v10 }
 0x35d   : > { %v1005_v51 = vpop.f32.mrf.mxu1 }
 0x35e   : > { %v1011_v52 = vsel %vm964_vm3, %v1005_v51, -inf }
 0x35f   : > { %1012 = vmax.xlane.f32.xlu1 %v1011_v52  ;;  %v2063_v53 = vpop.f32.mrf.mxu1 }
 0x361   : > { %v1008_v54 = vpop.f32.mrf.mxu1 }
 0x363   : > { %v2064_v55 = vpop.f32.mrf.mxu1 }
 0x3d0   : > { %v1118_v56 = vpop.f32.mrf.mxu1 }
 0x3d1   : > { %v1124_v57 = vsel %vm964_vm3, %v1118_v56, -inf }
 0x3d2   : > { %1125 = vmax.xlane.f32.xlu0 %v1124_v57  ;;  %v2075_v58 = vpop.f32.mrf.mxu1 }
 0x3d4   : > { %v1121_v59 = vpop.f32.mrf.mxu1 }
 0x3d6   : > { %v2076_v60 = vpop.f32.mrf.mxu1 }
 0x3d8   : > { %v1235_v61 = vpop.f32.mrf.mxu1 }
 0x3d9   : > { %v1241_v62 = vsel %vm964_vm3, %v1235_v61, -inf }
 0x3da   : > { %1242 = vmax.xlane.f32.xlu1 %v1241_v62  ;;  %v2087_v63 = vpop.f32.mrf.mxu1 }
 0x3db   : > { %v2276_v63 = vld [vmem:[%s2841_s26 + $0x8] sm:$0xff]  }
 0x3dc   : > { %v1238_v0 = vpop.f32.mrf.mxu1  ;;  %2108 = vmatpush3.bf16.msra.mxu1 %v2276_v63 }
 0x3dd   : > { %v2277_v0 = vld [vmem:[%s2841_s26] sm:$0xff]   ;;  %2109 = vmatprep.subr.bf16.mxu1 %v2552_v10 }
 0x3de   : > { %v2088_v2 = vpop.f32.mrf.mxu1 }
 0x3e0   : > { %v1351_v3 = vpop.f32.mrf.mxu1  ;;  %2110 = vmatpush3.bf16.msra.mxu1 %v2277_v0 }
 0x3e1   : > { %v1357_v4 = vsel %vm964_vm3, %v1351_v3, -inf  ;;  %2123 = vmatprep.subr.bf16.mxu1 %v2552_v10 }
 0x3e2   : > { %1358 = vmax.xlane.f32.xlu1 %v1357_v4  ;;  %v2099_v5 = vpop.f32.mrf.mxu1 }
 0x3e4   : > { %v1354_v6 = vpop.f32.mrf.mxu1 }
 0x3e6   : > { %v2100_v7 = vpop.f32.mrf.mxu1 }
 0x3e8   : > { %v1013_v8 = vpop.xlane.xlu1 %1012 }
 0x3e9   : > { %v1014_v9 = vsub.f32 %v1005_v51, %v1013_v8 }
 0x3eb   : > { %v1015_v11 = vmul.f32 1.442695, %v1014_v9 }
 0x3ed   : > { %2286 = vpow2.f32 %v1015_v11 }
 0x3fa   : > { %v2287_v12 = vpop.eup %2286 }
 0x3fb   : > { %v1017_v13 = vsel %vm964_vm3, %v2287_v12, 0.0 }
 0x3fc   : > { %1018 = vadd.xlane.f32.xlu0 %v1017_v13 }
 0x45b   : > { %v1126_v14 = vpop.xlane.xlu0 %1125 }
 0x45c   : > { %v1127_v15 = vsub.f32 %v1118_v56, %v1126_v14 }
 0x45e   : > { %v1128_v16 = vmul.f32 1.442695, %v1127_v15 }
 0x460   : > { %2288 = vpow2.f32 %v1128_v16 }
 0x463   : > { %v1243_v17 = vpop.xlane.xlu1 %1242 }
 0x464   : > { %v1244_v18 = vsub.f32 %v1235_v61, %v1243_v17 }
 0x466   : > { %v1245_v19 = vmul.f32 1.442695, %v1244_v18 }
 0x468   : > { %2290 = vpow2.f32 %v1245_v19 }
 0x46b   : > { %v1359_v25 = vpop.xlane.xlu1 %1358 }
 0x46c   : > { %v1360_v26 = vsub.f32 %v1351_v3, %v1359_v25  ;;  %v2278_v25 = vld [vmem:[%s2844_s12 + $0x8] sm:$0xff]  }
 0x46d   : > { %v2289_v20 = vpop.eup %2288 }
 0x46e   : > { %v1130_v21 = vsel %vm964_vm3, %v2289_v20, 0.0  ;;  %v1361_v27 = vmul.f32 1.442695, %v1360_v26  ;;  %v2279_v26 = vld [vmem:[%s2844_s12] sm:$0xff]  }
 0x46f   : > { %1131 = vadd.xlane.f32.xlu1 %v1130_v21 }
 0x475   : > { %v2291_v22 = vpop.eup %2290 }
 0x476   : > { %v1247_v23 = vsel %vm964_vm3, %v2291_v22, 0.0 }
 0x477   : > { %1248 = vadd.xlane.f32.xlu0 %v1247_v23 }
 0x480   : > { %1253 = vrot.lane.b32.xlu1 %v2954_v37, %s2554_s0 }
 0x485   : > { %v1019_v24 = vpop.xlane.xlu0 %1018 }
 0x486   : > { %2292 = vrcp.f32 %v1019_v24 }
 0x487   : > { %2294 = vpow2.f32 %v1361_v27  ;;  %v2281_v27 = vld [vmem:[%s2897_s15 + $0x10] sm:$0xff]  }
 0x48d   : > { %1137 = vrot.lane.b32.xlu0 %v2954_v37, %s2555_s16 }
 0x493   : > { %v2293_v28 = vpop.eup %2292 }
 0x494   : > { %v1021_v29 = vmul.f32 %v2293_v28, %v2287_v12  ;;  %v2295_v31 = vpop.eup %2294  ;;  %v1973_v12 = vld [vmem:[%s3221_s29] ss:$0 sm:$0xff] }
 0x495   : > { %v1363_v32 = vsel %vm964_vm3, %v2295_v31, 0.0 }
 0x496   : > { %v1022_v30 = vpack.c.bf16 %v1021_v29, %v1021_v29 }
 0x498   : > { %2068 = vmatmul.mubr.msk.bf16.vlgmr.msra.gmra.mxu0 %vm964_vm3, %v1022_v30 }
 0x499   : > { %2079 = vmatprep.mubr.msk.bf16.mxu0 %vm2553_vm2, %v2552_v10 }
 0x4a4   : > { %1364 = vadd.xlane.f32.xlu1 %v1363_v32  ;;  %v1977_v32 = vld [vmem:[%s733_s6] ss:$0 sm:$0xff] }
 0x4b5   : > { %1369 = vrot.lane.b32.xlu1 %v2954_v37, %s2556_s5  ;;  %s3229_s5 = sld [smem:[#allocation44_spill]] }
 0x4f8   : > { %v1132_v33 = vpop.xlane.xlu1 %1131 }
 0x4f9   : > { %2296 = vrcp.f32 %v1132_v33 }
 0x4fc   : > { %v1254_v40 = vpop.permute.xlu1 %1253 }
 0x4fd   : > { %v1259_v42 = vsel %vm1027_vm4, %v1254_v40, 0  ;;  %v2283_v40 = vld [vmem:[%s2897_s15] sm:$0xff]  }
 0x500   : > { %v1249_v34 = vpop.xlane.xlu0 %1248 }
 0x501   : > { %2298 = vrcp.f32 %v1249_v34  ;;  %v1978_v34 = vld [vmem:[%s736_s23] ss:$0 sm:$0xff]  ;;  %s3226_s23 = sld [smem:[#allocation17_spill]] }
 0x504   : > { %v1138_v35 = vpop.permute.xlu0 %1137 }
 0x505   : > { %v1143_v36 = vsel %vm1027_vm4, %v1138_v35, 0 }
 0x506   : > { %v2297_v38 = vpop.eup %2296  ;;  %2078 = vmatpush3.bf16.msra.mxu0 %v1143_v36 }
 0x507   : > { %2089 = vmatprep.subr.bf16.mxu0 %v2552_v10  ;;  %v1134_v39 = vmul.f32 %v2297_v38, %v2289_v20  ;;  %s3230_s11 = sand.u32 1, %s3226_s23  }
 0x509   : > { %v1135_v41 = vpack.c.bf16 %v1134_v39, %v1134_v39  ;;  %v2282_v39 = vld [vmem:[%s2897_s15 + $0x8] sm:$0xff]  }
 0x50b   : > { %2080 = vmatmul.mubr.msk.bf16.vlgmr.msra.gmra.mxu0 %vm964_vm3, %v1135_v41  ;;  %v1979_v41 = vld [vmem:[%s739_s9] ss:$0 sm:$0xff]  ;;  %s1690_s9 = sshll.u32 %s2903_s10, 4  ;;  %s3066_s9 = int_to_ptr.vmem [resolvable:$true] %s1690_s9 }
 0x50c   : > { %2090 = vmatpush3.bf16.msra.mxu0 %v1259_v42  ;;  %2091 = vmatprep.mubr.msk.bf16.mxu0 %vm2553_vm2, %v2552_v10 }
 0x50d   : > { %2101 = vmatprep.subr.bf16.mxu0 %v2552_v10 }
 0x50e   : > { %v2299_v37 = vpop.eup %2298 }
 0x50f   : > { %v1251_v43 = vmul.f32 %v2299_v37, %v2291_v22 }
 0x511   : > { %v1252_v44 = vpack.c.bf16 %v1251_v43, %v1251_v43 }
 0x513   : > { %2092 = vmatmul.mubr.msk.bf16.vlgmr.msra.gmra.mxu0 %vm964_vm3, %v1252_v44 }
 0x514   : > { %2103 = vmatprep.mubr.msk.bf16.mxu0 %vm2553_vm2, %v2552_v10 }
 0x52d   : > { %v1365_v45 = vpop.xlane.xlu1 %1364 }
 0x52e   : > { %2300 = vrcp.f32 %v1365_v45 }
 0x531   : > { %v1370_v46 = vpop.permute.xlu1 %1369 }
 0x532   : > { %v1375_v47 = vsel %vm1027_vm4, %v1370_v46, 0 }
 0x533   : > { %2102 = vmatpush3.bf16.msra.mxu0 %v1375_v47 }
 0x534   : > { %2115 = vmatprep.subr.bf16.mxu0 %v2552_v10 }
 0x53b   : > { %v2301_v48 = vpop.eup %2300 }
 0x53c   : > { %v1367_v49 = vmul.f32 %v2301_v48, %v2295_v31  ;;  %v1988_v48 = vld [vmem:[%s747_s27] ss:$0 sm:$0xff]  ;;  %s1677_s27 = scalar_lea.sflag [#allocation5], %s3230_s11 }
 0x53e   : > { %v1368_v50 = vpack.c.bf16 %v1367_v49, %v1367_v49 }
 0x540   : > { %2104 = vmatmul.mubr.msk.bf16.vlgmr.msra.gmra.mxu0 %vm964_vm3, %v1368_v50 }
 0x541   : > { %2119 = vmatprep.mubr.msk.bf16.mxu0 %vm2553_vm2, %v2552_v10  ;;  %2116 = vmatpush3.bf16.msra.mxu0 %v2278_v25 }
 0x542   : > { %2117 = vmatprep.subr.bf16.mxu0 %v2552_v10 }
 0x545   : > { %2118 = vmatpush3.bf16.msra.mxu0 %v2279_v26 }
 0x558   : > { %v1065_v51 = vpop.f32.mrf.mxu0 }
 0x559   : > { %1071 = vst.msk [vmem:[#allocation2] sm:$0xff] %vm964_vm3, %v1065_v51 }
 0x55a   : > { %v2069_v52 = vpop.f32.mrf.mxu0 }
 0x55c   : > { %v1068_v53 = vpop.f32.mrf.mxu0 }
 0x55e   : > { %v2070_v54 = vpop.f32.mrf.mxu0 }
 0x5cb   : > { %v1179_v55 = vpop.f32.mrf.mxu0 }
 0x5cc   : > { %1186 = vrot.lane.b32.xlu0 %v1179_v55, %s2557_s1  ;;  %s3064_s1 = scalar_lea.hbm %s3229_s5, %s1990_s25 }
 0x5cd   : > { %v2081_v56 = vpop.f32.mrf.mxu0 }
 0x5cf   : > { %v1182_v57 = vpop.f32.mrf.mxu0 }
 0x5d1   : > { %v2082_v58 = vpop.f32.mrf.mxu0 }
 0x5d3   : > { %v1295_v59 = vpop.f32.mrf.mxu0 }
 0x5d4   : > { %1302 = vrot.lane.b32.xlu1 %v1295_v59, %s2558_s22  ;;  %s2414_s22 = scalar_lea.vmem %s3066_s9, 128 }
 0x5d5   : > { %v2093_v60 = vpop.f32.mrf.mxu0  ;;  %p2415_p5 = scmp.ne.s32.totalorder %s3066_s9, %s2414_s22 }
 0x5d7   : > { %v1298_v61 = vpop.f32.mrf.mxu0  ;;  %p2416_p2 = pnand %p2415_p5, %p3231_p7 }
 0x5d9   : > { %v2094_v62 = vpop.f32.mrf.mxu0  ;;  %p2417_p13 = pneg %p2416_p2 }
 0x600   : > { %v1411_v2 = vpop.f32.mrf.mxu0 }
 0x601   : > { %1418 = vrot.lane.b32.xlu0 %v1411_v2, %s2559_s18  ;;  %s2560_s18 = smov [#allocation11]  }
 0x602   : > { %v2105_v3 = vpop.f32.mrf.mxu0  ;;  %s2418_s26 = sshll.u32 %s2560_s18, 4  ;;  %s2419_s26 = int_to_ptr.vmem [resolvable:$false] %s2418_s26 }
 0x603   : > { %s2420_s7 = scalar_lea.vmem %s2419_s26, 256  ;;  %p2421_p6 = scmp.lt.s32.totalorder %s3066_s9, %s2419_s26 }
 0x604   : > { %v1414_v4 = vpop.f32.mrf.mxu0  ;;  %p2422_p1 = scmp.lt.s32.totalorder %s2420_s7, %s2414_s22 }
 0x606   : > { %v2106_v5 = vpop.f32.mrf.mxu0  ;;  %p2423_p3 = por %p2422_p1, %p2421_p6 }
 0x608   : > { %p2424_p10 = pnand %p2423_p3, %p2417_p13 }
 0x63e   : > { %v1187_v6 = vpop.permute.xlu0 %1186 }
 0x63f   : > { %1190 = vst.msk [vmem:[#allocation2] sm:$0xff] %vm1189_vm5, %v1187_v6 }
 0x646   : > { %v1303_v7 = vpop.permute.xlu1 %1302 }
 0x647   : > { %1306 = vst.msk [vmem:[#allocation2] sm:$0xff] %vm1305_vm6, %v1303_v7 }
 0x673   : > { %v1419_v8 = vpop.permute.xlu0 %1418 }
 0x674   : > { %1422 = vst.msk [vmem:[#allocation2] sm:$0xff] %vm1421_vm7, %v1419_v8 }
 0x67b   : > { %v1423_v9 = vld [vmem:[#allocation2] sm:$0xff] }
 0x67c   : > { %v1428_v11 = vpack.c.bf16 %v1423_v9, %v1423_v9 }
 0x67e   : > { %2112 = vmatmul.mubr.msk.bf16.vlgmr.msra.gmra.mxu1 %vm761_vm1, %v1428_v11 }
 0x67f   : > { %2131 = vmatprep.mubr.msk.bf16.mxu1 %vm2553_vm2, %v2552_v10 }
 0x73e   : > { %v1485_v13 = vpop.f32.mrf.mxu1 }
 0x73f   : > { %v1486_v14 = vadd.f32 %v1973_v12, %v1485_v13 }
 0x740   : > { %v2113_v15 = vpop.f32.mrf.mxu1 }
 0x741   : > { %v1491_v16 = vadd.f32 %v1486_v14, %v2909_v1  ;;  %v2280_v1 = vld [vmem:[%s2897_s15 + $0x18] sm:$0xff]  }
 0x742   : > { %v1488_v17 = vpop.f32.mrf.mxu1  ;;  %2124 = vmatpush3.bf16.msra.mxu1 %v2280_v1 }
 0x743   : > { %v1494_v18 = vsel %vm761_vm1, %v1491_v16, 0.0  ;;  %2125 = vmatprep.subr.bf16.mxu1 %v2552_v10 }
 0x744   : > { %1495 = vadd.xlane.f32.xlu1 %v1494_v18  ;;  %v2114_v19 = vpop.f32.mrf.mxu1 }
 0x746   : > { %2126 = vmatpush3.bf16.msra.mxu1 %v2281_v27 }
 0x747   : > { %2127 = vmatprep.subr.bf16.mxu1 %v2552_v10 }
 0x74a   : > { %2128 = vmatpush3.bf16.msra.mxu1 %v2282_v39 }
 0x74b   : > { %2129 = vmatprep.subr.bf16.mxu1 %v2552_v10 }
 0x74e   : > { %2130 = vmatpush3.bf16.msra.mxu1 %v2283_v40 }
 0x7cd   : > { %v1496_v20 = vpop.xlane.xlu1 %1495 }
 0x7ce   : > { %v1497_v21 = vmul.f32 0.03125, %v1496_v20 }
 0x7d0   : > { %v1498_v22 = vsub.f32 %v1491_v16, %v1497_v21 }
 0x7d2   : > { %v1499_v23 = vmul.f32 %v1498_v22, %v1498_v22 }
 0x7d4   : > { %v1500_v24 = vsel %vm761_vm1, %v1499_v23, 0.0 }
 0x7d5   : > { %1501 = vadd.xlane.f32.xlu0 %v1500_v24 }
 0x85e   : > { %v1502_v28 = vpop.xlane.xlu0 %1501 }
 0x85f   : > { %v1503_v29 = vmul.f32 0.03125, %v1502_v28 }
 0x861   : > { %v1504_v30 = vadd.f32 1e-05, %v1503_v29 }
 0x863   : > { %2302 = vrsqrt.f32 %v1504_v30 }
 0x870   : > { %v2303_v31 = vpop.eup %2302 }
 0x871   : > { %v1506_v33 = vmul.f32 %v2303_v31, %v1498_v22 }
 0x873   : > { %v1513_v35 = vmul.f32 %v1977_v32, %v1506_v33 }
 0x875   : > { %v1520_v36 = vadd.f32 %v1978_v34, %v1513_v35 }
 0x877   : > { %v1525_v38 = vpack.c.bf16 %v1520_v36, %v1520_v36 }
 0x879   : > { %2120 = vmatmul.mubr.msk.bf16.vlgmr.msra.gmra.mxu0 %vm761_vm1, %v1525_v38 }
 0x939   : > { %v1582_v42 = vpop.f32.mrf.mxu0 }
 0x93a   : > { %v1583_v37 = vadd.f32 %v1979_v41, %v1582_v42 }
 0x93b   : > { %v2121_v43 = vpop.f32.mrf.mxu0 }
 0x93c   : > { %v1588_v44 = vmax.f32 %v1583_v37, 0.0 }
 0x93d   : > { %v1585_v45 = vpop.f32.mrf.mxu0 }
 0x93e   : > { %v1597_v46 = vpack.c.bf16 %v1588_v44, %v1588_v44 }
 0x93f   : > { %v2122_v47 = vpop.f32.mrf.mxu0 }
 0x940   : > { %2132 = vmatmul.mubr.msk.bf16.vlgmr.msra.gmra.mxu1 %vm1622_vm8, %v1597_v46 }
 0xa00   : > { %v1660_v10 = vpop.f32.mrf.mxu1 }
 0xa01   : > { %v1666_v49 = vadd.f32 %v1660_v10, %v1491_v16 }
 0xa02   : > { %v2133_v50 = vpop.f32.mrf.mxu1 }
 0xa03   : > { %v1674_v51 = vadd.f32 %v1988_v48, %v1666_v49 }
 0xa04   : > { %v1663_v52 = vpop.f32.mrf.mxu1 }
 0xa05   : > { %1675 = vst.msk [vmem:[%s2903_s10] sm:$0xff] %vm761_vm1, %v1674_v51 }
 0xa06   : > { %v2134_v53 = vpop.f32.mrf.mxu1 }
 0xa07   : > { %2427 = shalt.err (!%p2424_p10)
}
 0xa08   : > { %s2428_s10 = scalar_lea.hbm %s3064_s1, 128  ;;  %s2432_s12 = scalar_lea.hbm %s3229_s5, 256 }
 0xa09   : > { %p2429_p11 = scmp.ne.s32.totalorder %s3064_s1, %s2428_s10  ;;  %p2433_p0 = scmp.lt.s32.totalorder %s3064_s1, %s3229_s5 }
 0xa0a   : > { %p2434_p8 = scmp.lt.s32.totalorder %s2432_s12, %s2428_s10 }
 0xa0b   : > { %p2430_p12 = pnand %p2429_p11, %p3231_p7 }
 0xa0c   : > { %p2435_p4 = por %p2434_p8, %p2433_p0 }
 0xa0d   : > { %p2431_p9 = pneg %p2430_p12 }
 0xa0f   : > { %p2436_p5 = pnand %p2435_p4, %p2431_p9 }
 0xa11   : > { %2439 = shalt.err (!%p2436_p5)
}
 0xa12   : > { %2145 = dma.vmem_to_hbm [thread:$0]  (%p3231_p7), %s3066_s9, 128, %s3064_s1, %s1677_s27  }
 0xa13 PF: > { %s3232_s8 = sld [smem:[#allocation24_spill]] }
 0xa14   : > { %s3233_s28 = sld [smem:[#allocation16_spill]] }
 0xa15   : > { %s3234_s13 = sld [smem:[#allocation30_spill]] }
 0xa19   : > { %p2168_p2 = scmp.ge.s32.totalorder %s3232_s8, 2 }
 0xa1a   : > { %s1702_s3 = sand.u32 1, %s3233_s28  }
 0xa1b   : > { %p3235_p13 = scmp.ne.s32.totalorder %s3234_s13, 0  ;;  %s1703_s6 = scalar_lea.sflag [#allocation5], %s1702_s3 }
 0xa1d   : > { %p2162_p6 = pnand %p2168_p2, %p3235_p13 }
 0xa1f   : > { %p2163_p1 = pneg %p2162_p6 }
 0xa21   : > { %2497 = dma.done.wait (%p2163_p1), %s1703_s6, 128  }
 0xa22   : > { %2499 = vsyncadd (%p2163_p1), %s1703_s6, 4294967168  ;;  %s34_s23 = sadd.s32 1, %s3232_s8   ;;  %s3236_s29 = sld [smem:[#allocation17_spill]] }
 0xa23   : > { %p31_p3 = scmp.ge.s32.totalorder %s34_s23, 6   ;;  %s3237_s30 = sld [smem:[#allocation18_spill]] }
 0xa24   : > { %s3238_s15 = sld [smem:[#allocation28_spill]] }
 0xa25   : > { %s3239_s16 = sld [smem:[#allocation19_spill]] }
 0xa26   : > { %s3240_s17 = sld [smem:[#allocation20_spill]] }
 0xa27   : > { %s3241_s18 = sld [smem:[#allocation27_spill]]  ;;  %33 = sbr.rel (!%p31_p3) target bundleno = 27 (0x1b), region = 185 }
 0xa28   : > { %s3242_s19 = sld [smem:[#allocation22_spill]] }
 0xa29   : > { %s3243_s20 = sld [smem:[#allocation23_spill]] }
 0xa2a   : > { %s3244_s21 = sld [smem:[#allocation25_spill]] }
 0xa2b   : > { %s3245_s22 = sld [smem:[#allocation26_spill]] }
 0xa2c   :  { %1708 = vsyncpa [#allocation4], 1 }
 0xa2d   :  { %1710 = vsyncpa [#allocation4 + $0x1], 1 }
 0xa2e   :  { %1711 = vsyncpa [#allocation7], 1 }
 0xa2f   :  { %1713 = vsyncpa [#allocation7 + $0x1], 1 }
 0xa30   :  { %1714 = vsyncpa [#allocation10], 1 }
 0xa31   :  { %1716 = vsyncpa [#allocation10 + $0x1], 1 }
 0xa32   :  { %1717 = vsyncpa [#allocation5], 1 }
 0xa33   :  { %1719 = vsyncpa [#allocation5 + $0x1], 1 }

</bundles_post_ra>
